<compile_context>
chip_gen: v7x
topology: tpu7x:2x2x1
jax: 0.10.0
libtpu: 0.0.40
codegen_flags: <defaults>
</compile_context>

<pallas_src>
import functools

import jax
import jax.numpy as jnp
from jax.experimental import pallas as pl
from jax.experimental.pallas import tpu as pltpu


def _mm(a, w):
    # (1, T, Cin) x (Cin, Cout) -> (1, T, Cout) on the MXU, f32 accumulation.
    return jax.lax.dot_general(
        a, w, (((2,), (0,)), ((), ())), preferred_element_type=jnp.float32
    )


def block_kernel(
    x_ref, skip_ref,            # (1, T, Crp) f32, (1, T, Csp) f32
    wfg_ref, bfg_ref,           # (L, 2*Crp, 2*Cdp) bf16, (L, 1, 2*Cdp) f32
    wsr_ref, bsr_ref,           # (L, Cdp, Csp+Crp) bf16, (L, 1, Csp+Crp) f32
    x_out_ref, skip_out_ref,    # (1, T-RF, Crp) f32, (1, T-RF, Csp) f32
    *, dilations, cdp, csp,
):
    # Right-aligned formulation: everything stays at full length T in original time
    # coordinates; after layer l only the suffix [off_l, T) is valid (off_l = sum of
    # dilations so far).  Each layer needs the left conv tap X[t - d], obtained with a
    # static roll toward higher indices (garbage rows stay confined to the invalid
    # prefix), while residual / skip additions line up with no shift at all.
    x = x_ref[...]
    skip = skip_ref[...]
    for l, d in enumerate(dilations):
        # Left tap X[t - d]; rows [0, d) are don't-care (they never reach valid rows).
        # (pltpu.roll would route this through the XLU; jnp.roll -> static slices+concat.)
        x_prev = jnp.roll(x, d, axis=1)
        taps = jnp.concatenate(
            [x_prev.astype(jnp.bfloat16), x.astype(jnp.bfloat16)], axis=-1
        )                                                    # (1, T, 2*Crp) bf16
        y = _mm(taps, wfg_ref[l]) + bfg_ref[l]               # (1, T, 2*Cdp) f32
        out = jnp.tanh(y[..., :cdp]) * jax.nn.sigmoid(y[..., cdp:])   # gated, f32
        z = _mm(out.astype(jnp.bfloat16), wsr_ref[l]) + bsr_ref[l]    # (1, T, Csp+Crp)
        skip = skip + z[..., :csp]
        x = x + z[..., csp:]
    rf = sum(dilations)
    x_out_ref[...] = x[:, rf:, :]
    skip_out_ref[...] = skip[:, rf:, :]


def _round_up(n, m):
    return ((n + m - 1) // m) * m


def _pad_axis(a, axis, size):
    pad = size - a.shape[axis]
    if pad == 0:
        return a
    widths = [(0, 0)] * a.ndim
    widths[axis] = (0, pad)
    return jnp.pad(a, widths)


def wavenet_block(x_ntc, skip_ntc, params, dilations):
    """x_ntc: (B, T, Cr) f32, skip_ntc: (B, T, Cs) f32 (zeros == `skip is None`)."""
    B, T, Cr = x_ntc.shape
    Cs = skip_ntc.shape[-1]
    Cd = params["ws"].shape[1]
    L = len(dilations)
    rf = sum(dilations)
    t_final = T - rf
    assert t_final > 0, "sequence too short for the chosen dilations"

    LANE = 128
    Crp, Csp, Cdp = (_round_up(c, LANE) for c in (Cr, Cs, Cd))

    # ---- lane-dense, fused weights (init-time work in a real model) ----
    wf = _pad_axis(_pad_axis(params["wf"], 2, Crp), 3, Cdp)     # (L, 2, Crp, Cdp)
    wg = _pad_axis(_pad_axis(params["wg"], 2, Crp), 3, Cdp)
    bf = _pad_axis(params["bf"], 2, Cdp)                        # (L, 1, Cdp)
    bg = _pad_axis(params["bg"], 2, Cdp)
    ws = _pad_axis(_pad_axis(params["ws"], 1, Cdp), 2, Csp)     # (L, Cdp, Csp)
    wr = _pad_axis(_pad_axis(params["wr"], 1, Cdp), 2, Crp)     # (L, Cdp, Crp)
    bs = _pad_axis(params["bs"], 2, Csp)
    br = _pad_axis(params["br"], 2, Crp)

    # Rows [0:Crp] multiply the earlier tap (x_prev), rows [Crp:2Crp] the current tap;
    # columns [0:Cdp] -> filter, [Cdp:2Cdp] -> gate.
    wfg = jnp.concatenate(
        [jnp.concatenate([wf[:, 0], wg[:, 0]], axis=-1),
         jnp.concatenate([wf[:, 1], wg[:, 1]], axis=-1)], axis=1
    ).astype(jnp.bfloat16)                                      # (L, 2*Crp, 2*Cdp)
    bfg = jnp.concatenate([bf, bg], axis=-1)                    # (L, 1, 2*Cdp) f32
    # Columns [0:Csp] -> skip_squash, [Csp:Csp+Crp] -> residual_squash.
    wsr = jnp.concatenate([ws, wr], axis=-1).astype(jnp.bfloat16)   # (L, Cdp, Csp+Crp)
    bsr = jnp.concatenate([bs, br], axis=-1)                    # (L, 1, Csp+Crp) f32

    x_p = _pad_axis(x_ntc, 2, Crp)
    skip_p = _pad_axis(skip_ntc, 2, Csp)

    kernel = functools.partial(
        block_kernel, dilations=tuple(dilations), cdp=Cdp, csp=Csp
    )

    # Explicit VMEM budget: double-buffered activation blocks + resident weights + headroom.
    act_bytes = 4 * T * (Crp + Csp) + 4 * t_final * (Crp + Csp)
    w_bytes = 2 * (wfg.size + wsr.size) + 4 * (bfg.size + bsr.size)
    vmem_limit = int(min(2 * (act_bytes + w_bytes) + (16 << 20), 48 << 20))

    const = lambda shape: pl.BlockSpec(shape, lambda b: (0, 0, 0))
    x_out_p, skip_out_p = pl.pallas_call(
        kernel,
        grid=(B,),
        in_specs=[
            pl.BlockSpec((1, T, Crp), lambda b: (b, 0, 0)),
            pl.BlockSpec((1, T, Csp), lambda b: (b, 0, 0)),
            const((L, 2 * Crp, 2 * Cdp)),
            const((L, 1, 2 * Cdp)),
            const((L, Cdp, Csp + Crp)),
            const((L, 1, Csp + Crp)),
        ],
        out_specs=(
            pl.BlockSpec((1, t_final, Crp), lambda b: (b, 0, 0)),
            pl.BlockSpec((1, t_final, Csp), lambda b: (b, 0, 0)),
        ),
        out_shape=(
            jax.ShapeDtypeStruct((B, t_final, Crp), jnp.float32),
            jax.ShapeDtypeStruct((B, t_final, Csp), jnp.float32),
        ),
        compiler_params=pltpu.CompilerParams(
            dimension_semantics=("parallel",),
            vmem_limit_bytes=vmem_limit,
        ),
    )(x_p, skip_p, wfg, bfg, wsr, bsr)

    # TODO(synk): for very long sequences also tile the time axis with a receptive-field
    # halo (streaming per-layer carry) so the VMEM block footprint is bounded in T.
    return x_out_p[:, :, :Cr], skip_out_p[:, :, :Cs]


def reference_block(x, skip, params, dilations):
    """Pure-JAX f32 reference with the exact PyTorch Block semantics."""
    for l, d in enumerate(dilations):
        new_len = x.shape[1] - d
        xa, xb = x[:, :new_len], x[:, d:d + new_len]
        filt = jnp.tanh(xa @ params["wf"][l, 0] + xb @ params["wf"][l, 1] + params["bf"][l])
        gate = jax.nn.sigmoid(xa @ params["wg"][l, 0] + xb @ params["wg"][l, 1] + params["bg"][l])
        out = filt * gate
        skip = out @ params["ws"][l] + params["bs"][l] + skip[:, d:d + new_len]
        x = out @ params["wr"][l] + params["br"][l] + xb
    return x, skip


def init_params(key, n_layers, residual_channels, skip_channels, dilation_channels):
    """Deterministic synthetic weights (same shapes as the PyTorch convs)."""
    ks = jax.random.split(key, 8)
    s = 0.2
    Cr, Cs, Cd, L = residual_channels, skip_channels, dilation_channels, n_layers
    return {
        # PyTorch Conv1d(Cr, Cd, 2) weight (Cd, Cr, 2) -> per-tap (Cr, Cd) matrices.
        "wf": s * jax.random.normal(ks[0], (L, 2, Cr, Cd), jnp.float32),
        "bf": s * jax.random.normal(ks[1], (L, 1, Cd), jnp.float32),
        "wg": s * jax.random.normal(ks[2], (L, 2, Cr, Cd), jnp.float32),
        "bg": s * jax.random.normal(ks[3], (L, 1, Cd), jnp.float32),
        # 1x1 convs -> channel matmuls.
        "ws": s * jax.random.normal(ks[4], (L, Cd, Cs), jnp.float32),
        "bs": s * jax.random.normal(ks[5], (L, 1, Cs), jnp.float32),
        "wr": s * jax.random.normal(ks[6], (L, Cd, Cr), jnp.float32),
        "br": s * jax.random.normal(ks[7], (L, 1, Cr), jnp.float32),
    }


if __name__ == "__main__":
    key = jax.random.PRNGKey(0)
    n_layers = 3
    residual_channels, skip_channels, dilation_channels = 4, 6, 8
    B, T = 2, 64
    dilations = tuple(2 ** i for i in range(n_layers))   # (1, 2, 4)

    k_p, k_x = jax.random.split(key, 2)
    params = init_params(k_p, n_layers, residual_channels, skip_channels, dilation_channels)

    # Inputs in kernel layout (B, T, C).  PyTorch callers would pass NCT and transpose;
    # a zero `skip` reproduces the `skip_in is None` branch exactly.
    x = jax.random.normal(k_x, (B, T, residual_channels), jnp.float32)
    skip = jnp.zeros((B, T, skip_channels), jnp.float32)

    res_out, skip_out = wavenet_block(x, skip, params, dilations)
    jax.block_until_ready((res_out, skip_out))

    res_exp, skip_exp = reference_block(x, skip, params, dilations)
    assert res_out.shape == (B, T - sum(dilations), residual_channels)
    assert skip_out.shape == (B, T - sum(dilations), skip_channels)
    # bf16 matmul operands (f32 accumulation) vs. the pure-f32 reference.
    assert jnp.allclose(res_out, res_exp, atol=3e-2, rtol=3e-2), \
        float(jnp.max(jnp.abs(res_out - res_exp)))
    assert jnp.allclose(skip_out, skip_exp, atol=3e-2, rtol=3e-2), \
        float(jnp.max(jnp.abs(skip_out - skip_exp)))

    print("KERNEL_OK")
</pallas_src>

<mosaic_0001>
module attributes {stable_mosaic.version = 11 : i64} {
  func.func @block_kernel(%arg0: i32, %arg1: memref<1x64x128xf32, #tpu.memory_space<vmem>>, %arg2: memref<1x64x128xf32, #tpu.memory_space<vmem>>, %arg3: memref<3x256x256xbf16, #tpu.memory_space<vmem>>, %arg4: memref<3x1x256xf32, #tpu.memory_space<vmem>>, %arg5: memref<3x128x256xbf16, #tpu.memory_space<vmem>>, %arg6: memref<3x1x256xf32, #tpu.memory_space<vmem>>, %arg7: memref<1x57x128xf32, #tpu.memory_space<vmem>>, %arg8: memref<1x57x128xf32, #tpu.memory_space<vmem>>) attributes {dimension_semantics = [#tpu.dimension_semantics<parallel>], iteration_bounds = array<i64: 2>, scalar_prefetch = 0 : i64, scratch_operands = 0 : i64, tpu.core_type = #tpu.core_type<tc>, window_params = [{transform_indices = @transform_0, window_bounds = array<i64: 1, 64, 128>}, {transform_indices = @transform_1, window_bounds = array<i64: 1, 64, 128>}, {pipeline_mode = #tpu.pipeline_mode<synchronous>, transform_indices = @transform_2, window_bounds = array<i64: 3, 256, 256>}, {pipeline_mode = #tpu.pipeline_mode<synchronous>, transform_indices = @transform_3, window_bounds = array<i64: 3, 1, 256>}, {pipeline_mode = #tpu.pipeline_mode<synchronous>, transform_indices = @transform_4, window_bounds = array<i64: 3, 128, 256>}, {pipeline_mode = #tpu.pipeline_mode<synchronous>, transform_indices = @transform_5, window_bounds = array<i64: 3, 1, 256>}, {transform_indices = @transform_6, window_bounds = array<i64: 1, 57, 128>}, {transform_indices = @transform_7, window_bounds = array<i64: 1, 57, 128>}]} {
    %c0 = arith.constant 0 : index
    %c0_0 = arith.constant 0 : index
    %c0_1 = arith.constant 0 : index
    %0 = vector.load %arg1[%c0, %c0_0, %c0_1] : memref<1x64x128xf32, #tpu.memory_space<vmem>>, vector<1x64x128xf32>
    %c0_2 = arith.constant 0 : index
    %c0_3 = arith.constant 0 : index
    %c0_4 = arith.constant 0 : index
    %1 = vector.load %arg2[%c0_2, %c0_3, %c0_4] : memref<1x64x128xf32, #tpu.memory_space<vmem>>, vector<1x64x128xf32>
    %2 = vector.extract_strided_slice %0 {offsets = [0, 63, 0], sizes = [1, 1, 128], strides = [1, 1, 1]} : vector<1x64x128xf32> to vector<1x1x128xf32>
    %3 = vector.extract_strided_slice %0 {offsets = [0, 0, 0], sizes = [1, 63, 128], strides = [1, 1, 1]} : vector<1x64x128xf32> to vector<1x63x128xf32>
    %4 = tpu.concatenate %2, %3 in 1 : vector<1x1x128xf32>, vector<1x63x128xf32> -> vector<1x64x128xf32>
    %5 = arith.truncf %4 : vector<1x64x128xf32> to vector<1x64x128xbf16>
    %6 = arith.truncf %0 : vector<1x64x128xf32> to vector<1x64x128xbf16>
    %7 = tpu.concatenate %5, %6 in 2 : vector<1x64x128xbf16>, vector<1x64x128xbf16> -> vector<1x64x256xbf16>
    %c0_5 = arith.constant 0 : index
    %c0_6 = arith.constant 0 : index
    %c0_7 = arith.constant 0 : index
    %8 = vector.load %arg3[%c0_5, %c0_6, %c0_7] : memref<3x256x256xbf16, #tpu.memory_space<vmem>>, vector<1x256x256xbf16>
    %9 = vector.shape_cast %8 : vector<1x256x256xbf16> to vector<256x256xbf16>
    %cst = arith.constant dense<0.000000e+00> : vector<1x64x256xf32>
    %10 = tpu.matmul %7, %9, %cst {dimension_numbers = #tpu.dot_dimension_numbers<[2], [0], [0, 1], [1], [0, 0, 0, 1, 1, 1], [], []>} : vector<1x64x256xbf16>, vector<256x256xbf16>, vector<1x64x256xf32> -> vector<1x64x256xf32>
    %c0_8 = arith.constant 0 : index
    %c0_9 = arith.constant 0 : index
    %c0_10 = arith.constant 0 : index
    %11 = vector.load %arg4[%c0_8, %c0_9, %c0_10] : memref<3x1x256xf32, #tpu.memory_space<vmem>>, vector<1x1x256xf32>
    %12 = vector.shape_cast %11 : vector<1x1x256xf32> to vector<1x256xf32>
    %13 = vector.shape_cast %12 : vector<1x256xf32> to vector<1x1x256xf32>
    %14 = vector.broadcast %13 : vector<1x1x256xf32> to vector<1x64x256xf32>
    %15 = arith.addf %10, %14 : vector<1x64x256xf32>
    %16 = vector.extract_strided_slice %15 {offsets = [0, 0, 0], sizes = [1, 64, 128], strides = [1, 1, 1]} : vector<1x64x256xf32> to vector<1x64x128xf32>
    %17 = math.tanh %16 : vector<1x64x128xf32>
    %18 = vector.extract_strided_slice %15 {offsets = [0, 0, 128], sizes = [1, 64, 128], strides = [1, 1, 1]} : vector<1x64x256xf32> to vector<1x64x128xf32>
    %19 = arith.negf %18 : vector<1x64x128xf32>
    %20 = math.exp %19 : vector<1x64x128xf32>
    %cst_11 = arith.constant 1.000000e+00 : f32
    %21 = vector.broadcast %cst_11 : f32 to vector<1x64x128xf32>
    %22 = arith.addf %21, %20 : vector<1x64x128xf32>
    %23 = arith.divf %21, %22 : vector<1x64x128xf32>
    %24 = arith.mulf %17, %23 : vector<1x64x128xf32>
    %25 = arith.truncf %24 : vector<1x64x128xf32> to vector<1x64x128xbf16>
    %c0_12 = arith.constant 0 : index
    %c0_13 = arith.constant 0 : index
    %c0_14 = arith.constant 0 : index
    %26 = vector.load %arg5[%c0_12, %c0_13, %c0_14] : memref<3x128x256xbf16, #tpu.memory_space<vmem>>, vector<1x128x256xbf16>
    %27 = vector.shape_cast %26 : vector<1x128x256xbf16> to vector<128x256xbf16>
    %cst_15 = arith.constant dense<0.000000e+00> : vector<1x64x256xf32>
    %28 = tpu.matmul %25, %27, %cst_15 {dimension_numbers = #tpu.dot_dimension_numbers<[2], [0], [0, 1], [1], [0, 0, 0, 1, 1, 1], [], []>} : vector<1x64x128xbf16>, vector<128x256xbf16>, vector<1x64x256xf32> -> vector<1x64x256xf32>
    %c0_16 = arith.constant 0 : index
    %c0_17 = arith.constant 0 : index
    %c0_18 = arith.constant 0 : index
    %29 = vector.load %arg6[%c0_16, %c0_17, %c0_18] : memref<3x1x256xf32, #tpu.memory_space<vmem>>, vector<1x1x256xf32>
    %30 = vector.shape_cast %29 : vector<1x1x256xf32> to vector<1x256xf32>
    %31 = vector.shape_cast %30 : vector<1x256xf32> to vector<1x1x256xf32>
    %32 = vector.broadcast %31 : vector<1x1x256xf32> to vector<1x64x256xf32>
    %33 = arith.addf %28, %32 : vector<1x64x256xf32>
    %34 = vector.extract_strided_slice %33 {offsets = [0, 0, 0], sizes = [1, 64, 128], strides = [1, 1, 1]} : vector<1x64x256xf32> to vector<1x64x128xf32>
    %35 = arith.addf %1, %34 : vector<1x64x128xf32>
    %36 = vector.extract_strided_slice %33 {offsets = [0, 0, 128], sizes = [1, 64, 128], strides = [1, 1, 1]} : vector<1x64x256xf32> to vector<1x64x128xf32>
    %37 = arith.addf %0, %36 : vector<1x64x128xf32>
    %38 = vector.extract_strided_slice %37 {offsets = [0, 62, 0], sizes = [1, 2, 128], strides = [1, 1, 1]} : vector<1x64x128xf32> to vector<1x2x128xf32>
    %39 = vector.extract_strided_slice %37 {offsets = [0, 0, 0], sizes = [1, 62, 128], strides = [1, 1, 1]} : vector<1x64x128xf32> to vector<1x62x128xf32>
    %40 = tpu.concatenate %38, %39 in 1 : vector<1x2x128xf32>, vector<1x62x128xf32> -> vector<1x64x128xf32>
    %41 = arith.truncf %40 : vector<1x64x128xf32> to vector<1x64x128xbf16>
    %42 = arith.truncf %37 : vector<1x64x128xf32> to vector<1x64x128xbf16>
    %43 = tpu.concatenate %41, %42 in 2 : vector<1x64x128xbf16>, vector<1x64x128xbf16> -> vector<1x64x256xbf16>
    %c1 = arith.constant 1 : index
    %c0_19 = arith.constant 0 : index
    %c0_20 = arith.constant 0 : index
    %44 = vector.load %arg3[%c1, %c0_19, %c0_20] : memref<3x256x256xbf16, #tpu.memory_space<vmem>>, vector<1x256x256xbf16>
    %45 = vector.shape_cast %44 : vector<1x256x256xbf16> to vector<256x256xbf16>
    %cst_21 = arith.constant dense<0.000000e+00> : vector<1x64x256xf32>
    %46 = tpu.matmul %43, %45, %cst_21 {dimension_numbers = #tpu.dot_dimension_numbers<[2], [0], [0, 1], [1], [0, 0, 0, 1, 1, 1], [], []>} : vector<1x64x256xbf16>, vector<256x256xbf16>, vector<1x64x256xf32> -> vector<1x64x256xf32>
    %c1_22 = arith.constant 1 : index
    %c0_23 = arith.constant 0 : index
    %c0_24 = arith.constant 0 : index
    %47 = vector.load %arg4[%c1_22, %c0_23, %c0_24] : memref<3x1x256xf32, #tpu.memory_space<vmem>>, vector<1x1x256xf32>
    %48 = vector.shape_cast %47 : vector<1x1x256xf32> to vector<1x256xf32>
    %49 = vector.shape_cast %48 : vector<1x256xf32> to vector<1x1x256xf32>
    %50 = vector.broadcast %49 : vector<1x1x256xf32> to vector<1x64x256xf32>
    %51 = arith.addf %46, %50 : vector<1x64x256xf32>
    %52 = vector.extract_strided_slice %51 {offsets = [0, 0, 0], sizes = [1, 64, 128], strides = [1, 1, 1]} : vector<1x64x256xf32> to vector<1x64x128xf32>
    %53 = math.tanh %52 : vector<1x64x128xf32>
    %54 = vector.extract_strided_slice %51 {offsets = [0, 0, 128], sizes = [1, 64, 128], strides = [1, 1, 1]} : vector<1x64x256xf32> to vector<1x64x128xf32>
    %55 = arith.negf %54 : vector<1x64x128xf32>
    %56 = math.exp %55 : vector<1x64x128xf32>
    %cst_25 = arith.constant 1.000000e+00 : f32
    %57 = vector.broadcast %cst_25 : f32 to vector<1x64x128xf32>
    %58 = arith.addf %57, %56 : vector<1x64x128xf32>
    %59 = arith.divf %57, %58 : vector<1x64x128xf32>
    %60 = arith.mulf %53, %59 : vector<1x64x128xf32>
    %61 = arith.truncf %60 : vector<1x64x128xf32> to vector<1x64x128xbf16>
    %c1_26 = arith.constant 1 : index
    %c0_27 = arith.constant 0 : index
    %c0_28 = arith.constant 0 : index
    %62 = vector.load %arg5[%c1_26, %c0_27, %c0_28] : memref<3x128x256xbf16, #tpu.memory_space<vmem>>, vector<1x128x256xbf16>
    %63 = vector.shape_cast %62 : vector<1x128x256xbf16> to vector<128x256xbf16>
    %cst_29 = arith.constant dense<0.000000e+00> : vector<1x64x256xf32>
    %64 = tpu.matmul %61, %63, %cst_29 {dimension_numbers = #tpu.dot_dimension_numbers<[2], [0], [0, 1], [1], [0, 0, 0, 1, 1, 1], [], []>} : vector<1x64x128xbf16>, vector<128x256xbf16>, vector<1x64x256xf32> -> vector<1x64x256xf32>
    %c1_30 = arith.constant 1 : index
    %c0_31 = arith.constant 0 : index
    %c0_32 = arith.constant 0 : index
    %65 = vector.load %arg6[%c1_30, %c0_31, %c0_32] : memref<3x1x256xf32, #tpu.memory_space<vmem>>, vector<1x1x256xf32>
    %66 = vector.shape_cast %65 : vector<1x1x256xf32> to vector<1x256xf32>
    %67 = vector.shape_cast %66 : vector<1x256xf32> to vector<1x1x256xf32>
    %68 = vector.broadcast %67 : vector<1x1x256xf32> to vector<1x64x256xf32>
    %69 = arith.addf %64, %68 : vector<1x64x256xf32>
    %70 = vector.extract_strided_slice %69 {offsets = [0, 0, 0], sizes = [1, 64, 128], strides = [1, 1, 1]} : vector<1x64x256xf32> to vector<1x64x128xf32>
    %71 = arith.addf %35, %70 : vector<1x64x128xf32>
    %72 = vector.extract_strided_slice %69 {offsets = [0, 0, 128], sizes = [1, 64, 128], strides = [1, 1, 1]} : vector<1x64x256xf32> to vector<1x64x128xf32>
    %73 = arith.addf %37, %72 : vector<1x64x128xf32>
    %74 = vector.extract_strided_slice %73 {offsets = [0, 60, 0], sizes = [1, 4, 128], strides = [1, 1, 1]} : vector<1x64x128xf32> to vector<1x4x128xf32>
    %75 = vector.extract_strided_slice %73 {offsets = [0, 0, 0], sizes = [1, 60, 128], strides = [1, 1, 1]} : vector<1x64x128xf32> to vector<1x60x128xf32>
    %76 = tpu.concatenate %74, %75 in 1 : vector<1x4x128xf32>, vector<1x60x128xf32> -> vector<1x64x128xf32>
    %77 = arith.truncf %76 : vector<1x64x128xf32> to vector<1x64x128xbf16>
    %78 = arith.truncf %73 : vector<1x64x128xf32> to vector<1x64x128xbf16>
    %79 = tpu.concatenate %77, %78 in 2 : vector<1x64x128xbf16>, vector<1x64x128xbf16> -> vector<1x64x256xbf16>
    %c2 = arith.constant 2 : index
    %c0_33 = arith.constant 0 : index
    %c0_34 = arith.constant 0 : index
    %80 = vector.load %arg3[%c2, %c0_33, %c0_34] : memref<3x256x256xbf16, #tpu.memory_space<vmem>>, vector<1x256x256xbf16>
    %81 = vector.shape_cast %80 : vector<1x256x256xbf16> to vector<256x256xbf16>
    %cst_35 = arith.constant dense<0.000000e+00> : vector<1x64x256xf32>
    %82 = tpu.matmul %79, %81, %cst_35 {dimension_numbers = #tpu.dot_dimension_numbers<[2], [0], [0, 1], [1], [0, 0, 0, 1, 1, 1], [], []>} : vector<1x64x256xbf16>, vector<256x256xbf16>, vector<1x64x256xf32> -> vector<1x64x256xf32>
    %c2_36 = arith.constant 2 : index
    %c0_37 = arith.constant 0 : index
    %c0_38 = arith.constant 0 : index
    %83 = vector.load %arg4[%c2_36, %c0_37, %c0_38] : memref<3x1x256xf32, #tpu.memory_space<vmem>>, vector<1x1x256xf32>
    %84 = vector.shape_cast %83 : vector<1x1x256xf32> to vector<1x256xf32>
    %85 = vector.shape_cast %84 : vector<1x256xf32> to vector<1x1x256xf32>
    %86 = vector.broadcast %85 : vector<1x1x256xf32> to vector<1x64x256xf32>
    %87 = arith.addf %82, %86 : vector<1x64x256xf32>
    %88 = vector.extract_strided_slice %87 {offsets = [0, 0, 0], sizes = [1, 64, 128], strides = [1, 1, 1]} : vector<1x64x256xf32> to vector<1x64x128xf32>
    %89 = math.tanh %88 : vector<1x64x128xf32>
    %90 = vector.extract_strided_slice %87 {offsets = [0, 0, 128], sizes = [1, 64, 128], strides = [1, 1, 1]} : vector<1x64x256xf32> to vector<1x64x128xf32>
    %91 = arith.negf %90 : vector<1x64x128xf32>
    %92 = math.exp %91 : vector<1x64x128xf32>
    %cst_39 = arith.constant 1.000000e+00 : f32
    %93 = vector.broadcast %cst_39 : f32 to vector<1x64x128xf32>
    %94 = arith.addf %93, %92 : vector<1x64x128xf32>
    %95 = arith.divf %93, %94 : vector<1x64x128xf32>
    %96 = arith.mulf %89, %95 : vector<1x64x128xf32>
    %97 = arith.truncf %96 : vector<1x64x128xf32> to vector<1x64x128xbf16>
    %c2_40 = arith.constant 2 : index
    %c0_41 = arith.constant 0 : index
    %c0_42 = arith.constant 0 : index
    %98 = vector.load %arg5[%c2_40, %c0_41, %c0_42] : memref<3x128x256xbf16, #tpu.memory_space<vmem>>, vector<1x128x256xbf16>
    %99 = vector.shape_cast %98 : vector<1x128x256xbf16> to vector<128x256xbf16>
    %cst_43 = arith.constant dense<0.000000e+00> : vector<1x64x256xf32>
    %100 = tpu.matmul %97, %99, %cst_43 {dimension_numbers = #tpu.dot_dimension_numbers<[2], [0], [0, 1], [1], [0, 0, 0, 1, 1, 1], [], []>} : vector<1x64x128xbf16>, vector<128x256xbf16>, vector<1x64x256xf32> -> vector<1x64x256xf32>
    %c2_44 = arith.constant 2 : index
    %c0_45 = arith.constant 0 : index
    %c0_46 = arith.constant 0 : index
    %101 = vector.load %arg6[%c2_44, %c0_45, %c0_46] : memref<3x1x256xf32, #tpu.memory_space<vmem>>, vector<1x1x256xf32>
    %102 = vector.shape_cast %101 : vector<1x1x256xf32> to vector<1x256xf32>
    %103 = vector.shape_cast %102 : vector<1x256xf32> to vector<1x1x256xf32>
    %104 = vector.broadcast %103 : vector<1x1x256xf32> to vector<1x64x256xf32>
    %105 = arith.addf %100, %104 : vector<1x64x256xf32>
    %106 = vector.extract_strided_slice %105 {offsets = [0, 0, 0], sizes = [1, 64, 128], strides = [1, 1, 1]} : vector<1x64x256xf32> to vector<1x64x128xf32>
    %107 = arith.addf %71, %106 : vector<1x64x128xf32>
    %108 = vector.extract_strided_slice %105 {offsets = [0, 0, 128], sizes = [1, 64, 128], strides = [1, 1, 1]} : vector<1x64x256xf32> to vector<1x64x128xf32>
    %109 = arith.addf %73, %108 : vector<1x64x128xf32>
    %110 = vector.extract_strided_slice %109 {offsets = [0, 7, 0], sizes = [1, 57, 128], strides = [1, 1, 1]} : vector<1x64x128xf32> to vector<1x57x128xf32>
    %c0_47 = arith.constant 0 : index
    %c0_48 = arith.constant 0 : index
    %c0_49 = arith.constant 0 : index
    %111 = vector.load %arg7[%c0_47, %c0_48, %c0_49] : memref<1x57x128xf32, #tpu.memory_space<vmem>>, vector<1x57x128xf32>
    tpu.vector_store %arg7[%c0_47, %c0_48, %c0_49], %110 {strides = array<i32>} : memref<1x57x128xf32, #tpu.memory_space<vmem>>, vector<1x57x128xf32>,
    %112 = vector.extract_strided_slice %107 {offsets = [0, 7, 0], sizes = [1, 57, 128], strides = [1, 1, 1]} : vector<1x64x128xf32> to vector<1x57x128xf32>
    %c0_50 = arith.constant 0 : index
    %c0_51 = arith.constant 0 : index
    %c0_52 = arith.constant 0 : index
    %113 = vector.load %arg8[%c0_50, %c0_51, %c0_52] : memref<1x57x128xf32, #tpu.memory_space<vmem>>, vector<1x57x128xf32>
    tpu.vector_store %arg8[%c0_50, %c0_51, %c0_52], %112 {strides = array<i32>} : memref<1x57x128xf32, #tpu.memory_space<vmem>>, vector<1x57x128xf32>,
    return
  }
  func.func @transform_0(%arg0: i32) -> (i32, i32, i32) {
    %c0_i32 = arith.constant 0 : i32
    %c0_i32_0 = arith.constant 0 : i32
    %c0_i32_1 = arith.constant 0 : i32
    return %arg0, %c0_i32, %c0_i32_0 : i32, i32, i32
  }
  func.func @transform_1(%arg0: i32) -> (i32, i32, i32) {
    %c0_i32 = arith.constant 0 : i32
    %c0_i32_0 = arith.constant 0 : i32
    %c0_i32_1 = arith.constant 0 : i32
    return %arg0, %c0_i32, %c0_i32_0 : i32, i32, i32
  }
  func.func @transform_2(%arg0: i32) -> (i32, i32, i32) {
    %c0_i32 = arith.constant 0 : i32
    %c0_i32_0 = arith.constant 0 : i32
    %c0_i32_1 = arith.constant 0 : i32
    %c0_i32_2 = arith.constant 0 : i32
    return %c0_i32, %c0_i32_0, %c0_i32_1 : i32, i32, i32
  }
  func.func @transform_3(%arg0: i32) -> (i32, i32, i32) {
    %c0_i32 = arith.constant 0 : i32
    %c0_i32_0 = arith.constant 0 : i32
    %c0_i32_1 = arith.constant 0 : i32
    %c0_i32_2 = arith.constant 0 : i32
    return %c0_i32, %c0_i32_0, %c0_i32_1 : i32, i32, i32
  }
  func.func @transform_4(%arg0: i32) -> (i32, i32, i32) {
    %c0_i32 = arith.constant 0 : i32
    %c0_i32_0 = arith.constant 0 : i32
    %c0_i32_1 = arith.constant 0 : i32
    %c0_i32_2 = arith.constant 0 : i32
    return %c0_i32, %c0_i32_0, %c0_i32_1 : i32, i32, i32
  }
  func.func @transform_5(%arg0: i32) -> (i32, i32, i32) {
    %c0_i32 = arith.constant 0 : i32
    %c0_i32_0 = arith.constant 0 : i32
    %c0_i32_1 = arith.constant 0 : i32
    %c0_i32_2 = arith.constant 0 : i32
    return %c0_i32, %c0_i32_0, %c0_i32_1 : i32, i32, i32
  }
  func.func @transform_6(%arg0: i32) -> (i32, i32, i32) {
    %c0_i32 = arith.constant 0 : i32
    %c0_i32_0 = arith.constant 0 : i32
    %c0_i32_1 = arith.constant 0 : i32
    return %arg0, %c0_i32, %c0_i32_0 : i32, i32, i32
  }
  func.func @transform_7(%arg0: i32) -> (i32, i32, i32) {
    %c0_i32 = arith.constant 0 : i32
    %c0_i32_0 = arith.constant 0 : i32
    %c0_i32_1 = arith.constant 0 : i32
    return %arg0, %c0_i32, %c0_i32_0 : i32, i32, i32
  }
}

</mosaic_0001>

<bundles_post_ra>
// kernel: tpu_custom_call.1
= control target key start
LH: loop header
LB: loop body
LE: loop exit
PB: predicated region body
PF: predicated region fallthrough
CT: control target
= control target key end

     0   :  { %s3712_s0 = inlined_call_operand.hbm [shape: f32[2,64,128], index: 0, kind: input, shape index: {}]   ;;  %s3713_s1 = inlined_call_operand.hbm [shape: f32[2,64,128], index: 1, kind: input, shape index: {}]   ;;  %s3714_s2 = inlined_call_operand.hbm [shape: bf16[3,256,256], index: 2, kind: input, shape index: {}]   ;;  %s3715_s3 = inlined_call_operand.vmem [shape: f32[3,1,256], index: 3, kind: input, shape index: {}]   ;;  %s3716_s4 = inlined_call_operand.hbm [shape: bf16[3,128,256], index: 4, kind: input, shape index: {}]   ;;  %s3717_s5 = inlined_call_operand.vmem [shape: f32[3,1,256], index: 5, kind: input, shape index: {}]   ;;  %s3718_s6 = inlined_call_operand.vmem [shape: f32[2,57,128], index: 6, kind: output, shape index: {0}]   ;;  %s3719_s7 = inlined_call_operand.vmem [shape: f32[2,57,128], index: 7, kind: output, shape index: {1}]  }
   0x1   :  { %3727 = sst [smem:[#allocation13_spill]] %s3712_s0 }
   0x2   :  { %3728 = sst [smem:[#allocation14_spill]] %s3714_s2 }
   0x3   :  { %3729 = sst [smem:[#allocation15_spill]] %s3716_s4 }
   0x4   :  { %13 = vsyncpa [#allocation3], 0 }
   0x5   :  { %15 = vsyncpa [#allocation3 + $0x1], 0 }
   0x6   :  { %16 = vsyncpa [#allocation5], 0 }
   0x7   :  { %18 = vsyncpa [#allocation5 + $0x1], 0 }
   0x8   :  { %19 = vsyncpa [#allocation8], 0  ;;  %s3153_s24 = smov 0   ;;  %s3155_s25 = smov 0  }
   0x9   :  { %s3157_s26 = smov 0   ;;  %s3159_s27 = smov 0  }
   0xa LB: > { %s3172_s28 = sadd.s32 4294967295, %s3104_s27   ;;  %p45_p0 = scmp.ne.s32.totalorder %s3096_s25, %s3092_s24  ;;  %s3104_s27 = sphi %s3159_s27, %s3748_s27   ;;  %s3100_s26 = sphi %s3157_s26, %s3747_s26   ;;  %s3096_s25 = sphi %s3155_s25, %s3746_s25   ;;  %s3092_s24 = sphi %s3153_s24, %s3745_s24  }
   0xb   : > { %p3720_p1 = scmp.eq.s32.totalorder %s3172_s28, 0  ;;  %p2317_p2 = scmp.ge.s32.totalorder %s3104_s27, 1 }
   0xc   : > { %p218_p3 = scmp.lt.s32.totalorder %s3104_s27, 3  ;;  %s3106_s8 = smov [#allocation6]  }
   0xd   : > { %p3180_p4 = por %p3720_p1, %p45_p0  ;;  %s230_s9 = sshll.u32 %s3106_s8, 4  ;;  %s231_s9 = int_to_ptr.vmem [resolvable:$true] %s230_s9 }
   0xe   : > { %p3184_p5 = pnand %p2317_p2, %p218_p3  ;;  %s3107_s11 = smov [#allocation7]  }
   0xf   : > { %s3730_s29 = scalar_select %p3180_p4, 1, 0 }
  0x10   : > { %s3731_s30 = scalar_select %p3184_p5, 1, 0 }
  0x11   : > { %p2526_p6 = pneg %p3184_p5  ;;  %s246_s12 = sshll.u32 %s3107_s11, 4  ;;  %s3196_s12 = int_to_ptr.vmem [resolvable:$true] %s246_s12 }
  0x12   : > { %s3733_s2 = sld [smem:[#allocation14_spill]] }
  0x13   : > { %p3192_p7 = pnand %p2526_p6, %p3720_p1 }
  0x15   : > { %p2944_p9 = pneg %p3192_p7 }
  0x18   : > { %s2942_s15 = scalar_lea.hbm %s3733_s2, 12288 }
  0x19   : > { %p2943_p8 = scmp.ne.s32.totalorder %s3733_s2, %s2942_s15  ;;  %p2949_p12 = scmp.lt.u32.totalorder %s2942_s15, %s3733_s2 }
  0x1b   : > { %p2945_p10 = pnand %p2944_p9, %p2943_p8 }
  0x1d   : > { %p2946_p11 = pneg %p2945_p10 }
  0x1f   : > { %p2951_p13 = pnand %p2949_p12, %p2946_p11 }
  0x21   : > { %2954 = shalt.err (!%p2951_p13)
}
  0x22   : > { %s2955_s20 = scalar_lea.vmem %s231_s9, 12288  ;;  %p2963_p6 = scmp.lt.s32.totalorder %s231_s9, %s231_s9 }
  0x23   : > { %p2956_p0 = scmp.ne.s32.totalorder %s231_s9, %s2955_s20  ;;  %p2964_p1 = scmp.lt.s32.totalorder %s2955_s20, %s2955_s20 }
  0x25   : > { %p2958_p2 = pnand %p2956_p0, %p2944_p9  ;;  %p2965_p4 = por %p2964_p1, %p2963_p6 }
  0x27   : > { %p2959_p3 = pneg %p2958_p2 }
  0x29   : > { %p2966_p5 = pnand %p2965_p4, %p2959_p3 }
  0x2b   : > { %2969 = shalt.err (!%p2966_p5)
}
  0x2c   : > { %s3723_s21 = smov 128   ;;  %s3725_s22 = smov 8  }
  0x2d   : > { %2529 = dma.hbm_to_vmem [thread:$0]  (!%p3192_p7), %s3733_s2, 12288, %s231_s9, [#allocation5], %s3723_s21, %s3723_s21, %s3725_s22  }
  0x2e   : > { %s3734_s4 = sld [smem:[#allocation15_spill]] }
  0x34   : > { %s2970_s13 = scalar_lea.hbm %s3734_s4, 6144 }
  0x35   : > { %p2971_p1 = scmp.ne.s32.totalorder %s3734_s4, %s2970_s13  ;;  %p2977_p8 = scmp.lt.u32.totalorder %s2970_s13, %s3734_s4 }
  0x37   : > { %p2973_p4 = pnand %p2971_p1, %p2944_p9 }
  0x39   : > { %p2974_p5 = pneg %p2973_p4 }
  0x3b   : > { %p2979_p10 = pnand %p2977_p8, %p2974_p5 }
  0x3d   : > { %2982 = shalt.err (!%p2979_p10)
}
  0x3e   : > { %s2983_s9 = scalar_lea.vmem %s3196_s12, 6144  ;;  %p2991_p0 = scmp.lt.s32.totalorder %s3196_s12, %s3196_s12 }
  0x3f   : > { %p2984_p11 = scmp.ne.s32.totalorder %s3196_s12, %s2983_s9  ;;  %p2992_p2 = scmp.lt.s32.totalorder %s2983_s9, %s2983_s9 }
  0x41   : > { %p2986_p12 = pnand %p2984_p11, %p2944_p9  ;;  %p2993_p3 = por %p2992_p2, %p2991_p0 }
  0x43   : > { %p2987_p13 = pneg %p2986_p12 }
  0x45   : > { %p2994_p6 = pnand %p2993_p3, %p2987_p13 }
  0x47   : > { %2997 = shalt.err (!%p2994_p6)
}
  0x48   : > { %2532 = dma.hbm_to_vmem [thread:$0]  (!%p3192_p7), %s3734_s4, 6144, %s3196_s12, [#allocation8], %s3723_s21, %s3723_s21, %s3725_s22  }
  0x49   : > { %s3252_s20 = sadd.s32 1, %s3104_s27   ;;  %s32_s10 = sadd.s32 1, %s3100_s26 }
  0x4a   : > { %s29_s23 = ssub.s32 %s3104_s27, %s3252_s20  ;;  %p39_p9 = scmp.ne.s32.totalorder %s3100_s26, %s3096_s25 }
  0x4b   : > { %p30_p1 = scmp.eq.s32.totalorder %s29_s23, 0  ;;  %p40_p4 = scmp.eq.s32.totalorder %s3104_s27, 0 }
  0x4c   : > { %p2542_p5 = scmp.lt.s32.totalorder %s3104_s27, 2  ;;  %s263_s24 = sand.u32 1, %s3100_s26  }
  0x4d   : > { %s3263_s8 = scalar_select %p30_p1, %s3100_s26, %s32_s10  }
  0x4e   : > { %p41_p8 = por %p40_p4, %p39_p9  ;;  %s3265_s11 = sshll.u32 %s263_s24, 6 }
  0x4f   : > { %s2510_s13 = sshll.u32 %s3104_s27, 10  ;;  %s3735_s0 = sld [smem:[#allocation13_spill]] }
  0x50   : > { %s267_s16 = scalar_lea.vmem [#allocation2], %s3265_s11  ;;  %p3274_p7 = pnand %p2542_p5, %p41_p8 }
  0x51   : > { %s274_s17 = sshll.u32 %s267_s16, 4  ;;  %s3283_s10 = scalar_lea.hbm %s3713_s1, %s2510_s13  ;;  %s3278_s17 = int_to_ptr.vmem [resolvable:$true] %s274_s17 }
  0x52   : > { %s3285_s23 = scalar_lea.sflag [#allocation3], %s263_s24  ;;  %p3000_p11 = pneg %p3274_p7 }
  0x55   : > { %s3271_s12 = scalar_lea.hbm %s3735_s0, %s2510_s13  ;;  %s3003_s21 = scalar_lea.hbm %s3735_s0, 2048 }
  0x56   : > { %s2998_s14 = scalar_lea.hbm %s3271_s12, 1024  ;;  %p3004_p0 = scmp.lt.u32.totalorder %s3271_s12, %s3735_s0 }
  0x57   : > { %p2999_p10 = scmp.ne.s32.totalorder %s3271_s12, %s2998_s14  ;;  %p3005_p2 = scmp.lt.u32.totalorder %s3003_s21, %s2998_s14 }
  0x58   : > { %p3007_p6 = scmp.lt.u32.totalorder %s2998_s14, %s3271_s12 }
  0x59   : > { %p3001_p12 = pnand %p3000_p11, %p2999_p10  ;;  %p3006_p3 = por %p3005_p2, %p3004_p0 }
  0x5b   : > { %p3002_p13 = pneg %p3001_p12  ;;  %p3008_p9 = por %p3007_p6, %p3006_p3 }
  0x5d   : > { %p3009_p1 = pnand %p3008_p9, %p3002_p13 }
  0x5f   : > { %3012 = shalt.err (!%p3009_p1)
}
  0x60   : > { %s3013_s24 = scalar_lea.vmem %s3278_s17, 1024  ;;  %s3110_s13 = smov [#allocation2]  }
  0x61   : > { %p3014_p4 = scmp.ne.s32.totalorder %s3278_s17, %s3013_s24  ;;  %s3018_s18 = sshll.u32 %s3110_s13, 4  ;;  %s3019_s18 = int_to_ptr.vmem [resolvable:$false] %s3018_s18 }
  0x62   : > { %s3020_s2 = scalar_lea.vmem %s3019_s18, 2048  ;;  %p3021_p10 = scmp.lt.s32.totalorder %s3278_s17, %s3019_s18 }
  0x63   : > { %p3016_p5 = pnand %p3014_p4, %p3000_p11  ;;  %p3022_p12 = scmp.lt.s32.totalorder %s3020_s2, %s3013_s24 }
  0x65   : > { %p3017_p8 = pneg %p3016_p5  ;;  %p3023_p0 = por %p3022_p12, %p3021_p10 }
  0x67   : > { %p3024_p2 = pnand %p3023_p0, %p3017_p8 }
  0x69   : > { %3027 = shalt.err (!%p3024_p2)
}
  0x6a   : > { %s3737_s21 = smov 8   ;;  %s3738_s22 = smov 128  }
  0x6b   : > { %2536 = dma.hbm_to_vmem [thread:$0]  (!%p3274_p7), %s3271_s12, 1024, %s3278_s17, %s3285_s23, %s3738_s22, %s3738_s22, %s3737_s21  }
  0x6c   : > { %s288_s19 = scalar_lea.vmem [#allocation4], %s3265_s11  ;;  %s284_s15 = sand.u32 1, %s3104_s27  }
  0x6d   : > { %s295_s14 = sshll.u32 %s288_s19, 4  ;;  %s3320_s16 = scalar_lea.sflag [#allocation5], %s284_s15  ;;  %s3318_s14 = int_to_ptr.vmem [resolvable:$true] %s295_s14 }
  0x6e   : > { %s3028_s24 = scalar_lea.hbm %s3283_s10, 1024  ;;  %s3033_s2 = scalar_lea.hbm %s3713_s1, 2048 }
  0x6f   : > { %p3029_p13 = scmp.ne.s32.totalorder %s3283_s10, %s3028_s24  ;;  %p3034_p9 = scmp.lt.u32.totalorder %s3283_s10, %s3713_s1 }
  0x70   : > { %p3035_p1 = scmp.lt.u32.totalorder %s3033_s2, %s3028_s24  ;;  %p3037_p5 = scmp.lt.u32.totalorder %s3028_s24, %s3283_s10 }
  0x71   : > { %p3031_p3 = pnand %p3029_p13, %p3000_p11 }
  0x72   : > { %p3036_p4 = por %p3035_p1, %p3034_p9 }
  0x73   : > { %p3032_p6 = pneg %p3031_p3 }
  0x74   : > { %p3038_p8 = por %p3037_p5, %p3036_p4 }
  0x76   : > { %p3039_p10 = pnand %p3038_p8, %p3032_p6 }
  0x78   : > { %3042 = shalt.err (!%p3039_p10)
}
  0x79   : > { %s3043_s27 = scalar_lea.vmem %s3318_s14, 1024  ;;  %s3111_s11 = smov [#allocation4]  }
  0x7a   : > { %p3044_p12 = scmp.ne.s32.totalorder %s3318_s14, %s3043_s27  ;;  %s3048_s12 = sshll.u32 %s3111_s11, 4  ;;  %s3049_s12 = int_to_ptr.vmem [resolvable:$false] %s3048_s12 }
  0x7b   : > { %s3050_s0 = scalar_lea.vmem %s3049_s12, 2048  ;;  %p3051_p13 = scmp.lt.s32.totalorder %s3318_s14, %s3049_s12 }
  0x7c   : > { %p3046_p0 = pnand %p3044_p12, %p3000_p11  ;;  %p3052_p3 = scmp.lt.s32.totalorder %s3050_s0, %s3043_s27 }
  0x7e   : > { %p3047_p2 = pneg %p3046_p0  ;;  %p3053_p9 = por %p3052_p3, %p3051_p13 }
  0x80   : > { %p3054_p1 = pnand %p3053_p9, %p3047_p2 }
  0x82   : > { %3057 = shalt.err (!%p3054_p1)
}
  0x83   : > { %2539 = dma.hbm_to_vmem [thread:$0]  (!%p3274_p7), %s3283_s10, 1024, %s3318_s14, %s3320_s16, %s3738_s22, %s3738_s22, %s3737_s21  }
  0x84   : > { %p3739_p11 = scmp.ne.s32.totalorder %s3731_s30, 0 }
  0x85   : > { %s309_s4 = sand.u32 (!%p3739_p11), 1, %s3096_s25   ;;  %p3740_p6 = scmp.ne.s32.totalorder (!%p3739_p11), %s3730_s29, 0 }
  0x86   : > { %307 = sbr.rel (%p3739_p11) target bundleno = 1698 (0x6a2), region = 44  ;;  %s2328_s17 = sshll.u32 (!%p3739_p11), %s309_s4, 6 }
  0x87   : > { %s310_s23 = scalar_lea.sflag (!%p3739_p11), [#allocation3], %s309_s4  ;;  %s3352_s19 = scalar_lea.vmem (!%p3739_p11), [#allocation2], %s2328_s17 }
  0x8d   : > { %3075 = dma.done.wait (%p3740_p6), %s310_s23, 1024  }
  0x8e   : > { %3077 = vsyncadd (%p3740_p6), %s310_s23, 4294966272  ;;  %s318_s9 = sand.u32 1, %s3172_s28   ;;  %s3359_s10 = scalar_lea.vmem [#allocation4], %s2328_s17 }
  0x8f   : > { %s319_s15 = scalar_lea.sflag [#allocation5], %s318_s9 }
  0x90   : > { %3079 = dma.done.wait (%p3740_p6), %s319_s15, 1024  }
  0x91   : > { %3081 = vsyncadd (%p3740_p6), %s319_s15, 4294966272  ;;  %p3741_p7 = scmp.eq.s32.totalorder %s3172_s28, 0 }
  0x93   : > { %3083 = dma.done.wait (%p3741_p7), [#allocation5], 12288   ;;  %p3742_p4 = pmov %p3741_p7 }
  0x95   : > { %3085 = vsyncadd (%p3742_p4), [#allocation5], 4294955008  ;;  %p3743_p5 = pmov %p3742_p4 }
  0x96   : > { %p3744_p8 = pmov %p3742_p4 }
  0x97   : > { %3087 = dma.done.wait (%p3743_p5), [#allocation8], 6144  }
  0x98   : > { %3089 = vsyncadd (%p3744_p8), [#allocation8], 4294961152  ;;  %v2582_v0 = vld [vmem:[#allocation6 + $0x4] ss:$8 sps:$4 sm:$0xff]   ;;  %v2584_v1 = vld [vmem:[#allocation6] ss:$8 sps:$4 sm:$0xff]  }
  0x99   : > { %644 = vmatprep.subr.bf16.mxu0 %v2582_v0  ;;  %v2585_v2 = vld [vmem:[#allocation6 + $0x14] ss:$8 sps:$4 sm:$0xff]   ;;  %v2587_v3 = vld [vmem:[#allocation6 + $0x10] ss:$8 sps:$4 sm:$0xff]   ;;  %v2588_v4 = vld [vmem:[#allocation6 + $0x24] ss:$8 sps:$4 sm:$0xff]  }
  0x9a   : > { %645 = vmatpush1.bf16.msra.mxu0 %v2584_v1  ;;  %v2590_v5 = vld [vmem:[#allocation6 + $0x20] ss:$8 sps:$4 sm:$0xff]   ;;  %v2591_v6 = vld [vmem:[#allocation6 + $0x34] ss:$8 sps:$4 sm:$0xff]   ;;  %v2593_v7 = vld [vmem:[#allocation6 + $0x30] ss:$8 sps:$4 sm:$0xff]  }
  0x9b   : > { %646 = vmatprep.subr.bf16.mxu0 %v2585_v2  ;;  %v2594_v8 = vld [vmem:[#allocation6 + $0x44] ss:$8 sps:$4 sm:$0xff]   ;;  %v2596_v9 = vld [vmem:[#allocation6 + $0x40] ss:$8 sps:$4 sm:$0xff]   ;;  %v2597_v10 = vld [vmem:[#allocation6 + $0x54] ss:$8 sps:$4 sm:$0xff]  }
  0x9c   : > { %v2599_v11 = vld [vmem:[#allocation6 + $0x50] ss:$8 sps:$4 sm:$0xff]   ;;  %v2600_v12 = vld [vmem:[#allocation6 + $0x64] ss:$8 sps:$4 sm:$0xff]   ;;  %v2602_v16 = vld [vmem:[#allocation6 + $0x60] ss:$8 sps:$4 sm:$0xff]  }
  0x9d   : > { %v3374_v13 = vld [vmem:[%s3352_s19] sm:$0xff]  ;;  %v3377_v14 = vld [vmem:[%s3352_s19 + $0x8] sm:$0xff]  ;;  %v2603_v17 = vld [vmem:[#allocation6 + $0x74] ss:$8 sps:$4 sm:$0xff]   ;;  %vm408_vm0 = vcmask 1040384   ;;  %vm992_vm1 = vcmask 1041408  }
  0x9e   : > { %647 = vmatpush1.bf16.msra.mxu0 %v2587_v3  ;;  %v436_v15 = vpack.c.bf16 %v3377_v14, %v3374_v13  ;;  %v2605_v18 = vld [vmem:[#allocation6 + $0x70] ss:$8 sps:$4 sm:$0xff]   ;;  %v2606_v19 = vld [vmem:[#allocation6 + $0x84] ss:$8 sps:$4 sm:$0xff]   ;;  %v2608_v20 = vld [vmem:[#allocation6 + $0x80] ss:$8 sps:$4 sm:$0xff]  }
  0x9f   : > { %648 = vmatprep.subr.bf16.mxu0 %v2588_v4  ;;  %v2609_v21 = vld [vmem:[#allocation6 + $0x94] ss:$8 sps:$4 sm:$0xff]   ;;  %v2611_v22 = vld [vmem:[#allocation6 + $0x90] ss:$8 sps:$4 sm:$0xff]   ;;  %v2612_v23 = vld [vmem:[#allocation6 + $0xa4] ss:$8 sps:$4 sm:$0xff]  }
  0xa0   : > { %676 = vmatprep.mubr.bf16.mxu0 %v436_v15  ;;  %v2614_v24 = vld [vmem:[#allocation6 + $0xa0] ss:$8 sps:$4 sm:$0xff]   ;;  %v2615_v25 = vld [vmem:[#allocation6 + $0xb4] ss:$8 sps:$4 sm:$0xff]   ;;  %v2617_v26 = vld [vmem:[#allocation6 + $0xb0] ss:$8 sps:$4 sm:$0xff]  }
  0xa1   : > { %v2618_v27 = vld [vmem:[#allocation6 + $0xc4] ss:$8 sps:$4 sm:$0xff]   ;;  %v2620_v28 = vld [vmem:[#allocation6 + $0xc0] ss:$8 sps:$4 sm:$0xff]   ;;  %v2621_v29 = vld [vmem:[#allocation6 + $0xd4] ss:$8 sps:$4 sm:$0xff]  }
  0xa2   : > { %649 = vmatpush1.bf16.msra.mxu0 %v2590_v5  ;;  %v2623_v30 = vld [vmem:[#allocation6 + $0xd0] ss:$8 sps:$4 sm:$0xff]   ;;  %v2624_v31 = vld [vmem:[#allocation6 + $0xe4] ss:$8 sps:$4 sm:$0xff]   ;;  %v2626_v33 = vld [vmem:[#allocation6 + $0xe0] ss:$8 sps:$4 sm:$0xff]  }
  0xa3   : > { %650 = vmatprep.subr.bf16.mxu0 %v2591_v6  ;;  %v3382_v32 = vld [vmem:[%s3352_s19 + $0x38] sm:$0xff]  ;;  %v409_v35 = vrot.slane %v3374_v13, 7  ;;  %v410_v36 = vrot.slane %v3377_v14, 7  ;;  %v3388_v39 = vld [vmem:[%s3352_s19 + $0x10] sm:$0xff]  ;;  %v3402_v49 = vld [vmem:[%s3352_s19 + $0x20] sm:$0xff]  ;;  %vm1580_vm2 = vcmask 1043456  }
  0xa4   : > { %v2627_v34 = vld [vmem:[#allocation6 + $0xf4] ss:$8 sps:$4 sm:$0xff]   ;;  %v399_v37 = vrot.slane %v3382_v32, 7  ;;  %v2629_v38 = vld [vmem:[#allocation6 + $0xf0] ss:$8 sps:$4 sm:$0xff]   ;;  %v412_v44 = vrot.slane %v3388_v39, 7 }
  0xa5   : > { %v3391_v40 = vld [vmem:[%s3352_s19 + $0x18] sm:$0xff]  ;;  %v411_v41 = vsel %vm408_vm0, %v409_v35, %v410_v36  ;;  %v3405_v50 = vld [vmem:[%s3352_s19 + $0x28] sm:$0xff]  ;;  %v416_v52 = vrot.slane %v3402_v49, 7  ;;  %v3414_v57 = vld [vmem:[%s3352_s19 + $0x30] sm:$0xff]  ;;  %p371_p10 = scmp.lt.s32.totalorder %s3172_s28, 1 }
  0xa6   : > { %651 = vmatpush1.bf16.msra.mxu0 %v2593_v7  ;;  %v431_v42 = vsel %vm408_vm0, %v399_v37, %v409_v35  ;;  %v414_v45 = vrot.slane %v3391_v40, 7  ;;  %v437_v46 = vpack.c.bf16 %v3391_v40, %v3388_v39  ;;  %v413_v47 = vsel %vm408_vm0, %v410_v36, %v412_v44  ;;  %v2630_v0 = vld [vmem:[#allocation7 + $0x4] ss:$8 sps:$4 sm:$0xff]   ;;  %v2632_v1 = vld [vmem:[#allocation7] ss:$8 sps:$4 sm:$0xff]  }
  0xa7   : > { %652 = vmatprep.subr.bf16.mxu0 %v2594_v8  ;;  %v432_v43 = vpack.c.bf16 %v411_v41, %v431_v42  ;;  %v418_v53 = vrot.slane %v3405_v50, 7  ;;  %v438_v54 = vpack.c.bf16 %v3405_v50, %v3402_v49  ;;  %v420_v59 = vrot.slane %v3414_v57, 7  ;;  %893 = vmatprep.subr.bf16.mxu1 %v2630_v0  ;;  %v2633_v2 = vld [vmem:[#allocation7 + $0x14] ss:$8 sps:$4 sm:$0xff]   ;;  %v2635_v3 = vld [vmem:[#allocation7 + $0x10] ss:$8 sps:$4 sm:$0xff]  }
  0xa8   : > { %v415_v48 = vsel %vm408_vm0, %v412_v44, %v414_v45  ;;  %v417_v55 = vsel %vm408_vm0, %v414_v45, %v416_v52  ;;  %v439_v60 = vpack.c.bf16 %v3382_v32, %v3414_v57  ;;  %894 = vmatpush1.bf16.msra.mxu1 %v2632_v1  ;;  %v2636_v4 = vld [vmem:[#allocation7 + $0x24] ss:$8 sps:$4 sm:$0xff]   ;;  %v2638_v5 = vld [vmem:[#allocation7 + $0x20] ss:$8 sps:$4 sm:$0xff]   ;;  %v2639_v6 = vld [vmem:[#allocation7 + $0x34] ss:$8 sps:$4 sm:$0xff]  }
  0xa9   : > { %v433_v51 = vpack.c.bf16 %v415_v48, %v413_v47  ;;  %v419_v56 = vsel %vm408_vm0, %v416_v52, %v418_v53  ;;  %v421_v61 = vsel %vm408_vm0, %v418_v53, %v420_v59  ;;  %v422_v62 = vsel %vm408_vm0, %v420_v59, %v399_v37  ;;  %895 = vmatprep.subr.bf16.mxu1 %v2633_v2  ;;  %v2641_v7 = vld [vmem:[#allocation7 + $0x30] ss:$8 sps:$4 sm:$0xff]   ;;  %v2642_v8 = vld [vmem:[#allocation7 + $0x44] ss:$8 sps:$4 sm:$0xff]   ;;  %v2650_v15 = vld [vmem:[#allocation7 + $0x60] ss:$8 sps:$4 sm:$0xff]  }
  0xaa   : > { %653 = vmatpush1.bf16.msra.mxu0 %v2596_v9  ;;  %v434_v58 = vpack.c.bf16 %v419_v56, %v417_v55  ;;  %v435_v63 = vpack.c.bf16 %v422_v62, %v421_v61  ;;  %v2644_v9 = vld [vmem:[#allocation7 + $0x40] ss:$8 sps:$4 sm:$0xff]   ;;  %s3750_s28 = smov (!%p371_p10, %s3172_s28), 1 }
  0xab   : > { %654 = vmatprep.subr.bf16.mxu0 %v2597_v10  ;;  %v2645_v10 = vld [vmem:[#allocation7 + $0x54] ss:$8 sps:$4 sm:$0xff]   ;;  %s2512_s12 = sshll.u32 %s3750_s28, 6 }
  0xac   : > { %896 = vmatpush1.bf16.msra.mxu1 %v2635_v3  ;;  %s3660_s17 = scalar_lea.vmem %s3719_s7, %s2512_s12  ;;  %s3666_s9 = scalar_lea.vmem %s3718_s6, %s2512_s12 }
  0xad   : > { %897 = vmatprep.subr.bf16.mxu1 %v2636_v4 }
  0xae   : > { %655 = vmatpush1.bf16.msra.mxu0 %v2599_v11  ;;  %v2647_v11 = vld [vmem:[#allocation7 + $0x50] ss:$8 sps:$4 sm:$0xff]  }
  0xaf   : > { %656 = vmatprep.subr.bf16.mxu0 %v2600_v12  ;;  %v2648_v12 = vld [vmem:[#allocation7 + $0x64] ss:$8 sps:$4 sm:$0xff]  }
  0xb0   : > { %898 = vmatpush1.bf16.msra.mxu1 %v2638_v5 }
  0xb1   : > { %899 = vmatprep.subr.bf16.mxu1 %v2639_v6 }
  0xb2   : > { %657 = vmatpush1.bf16.msra.mxu0 %v2602_v16  ;;  %v2651_v16 = vld [vmem:[#allocation7 + $0x74] ss:$8 sps:$4 sm:$0xff]  }
  0xb3   : > { %658 = vmatprep.subr.bf16.mxu0 %v2603_v17  ;;  %v2653_v17 = vld [vmem:[#allocation7 + $0x70] ss:$8 sps:$4 sm:$0xff]  }
  0xb4   : > { %900 = vmatpush1.bf16.msra.mxu1 %v2641_v7 }
  0xb5   : > { %901 = vmatprep.subr.bf16.mxu1 %v2642_v8 }
  0xb6   : > { %659 = vmatpush1.bf16.msra.mxu0 %v2605_v18  ;;  %v3112_v18 = vmov 0  }
  0xb7   : > { %660 = vmatprep.subr.bf16.mxu0 %v2606_v19  ;;  %925 = vmatprep.mubr.bf16.mxu1 %v3112_v18  ;;  %v2656_v19 = vld [vmem:[#allocation6 + $0x104] ss:$8 sps:$4 sm:$0xff]  }
  0xb8   : > { %902 = vmatpush1.bf16.msra.mxu1 %v2644_v9 }
  0xb9   : > { %903 = vmatprep.subr.bf16.mxu1 %v2645_v10 }
  0xba   : > { %661 = vmatpush1.bf16.msra.mxu0 %v2608_v20  ;;  %v474_v20 = vlaneseq }
  0xbb   : > { %662 = vmatprep.subr.bf16.mxu0 %v2609_v21 }
  0xbc   : > { %904 = vmatpush1.bf16.msra.mxu1 %v2647_v11  ;;  %v475_v21 = vshrl.u32 %v474_v20, 7 }
  0xbd   : > { %905 = vmatprep.subr.bf16.mxu1 %v2648_v12 }
  0xbe   : > { %663 = vmatpush1.bf16.msra.mxu0 %v2611_v22  ;;  %v3423_v22 = vsub.s32 1, %v475_v21 }
  0xbf   : > { %664 = vmatprep.subr.bf16.mxu0 %v2612_v23  ;;  %v472_v23 = vld [vmem:[%s3715_s3] sm:$0x3] }
  0xc0   : > { %906 = vmatpush1.bf16.msra.mxu1 %v2650_v15 }
  0xc1   : > { %907 = vmatprep.subr.bf16.mxu1 %v2651_v16 }
  0xc2   : > { %665 = vmatpush1.bf16.msra.mxu0 %v2614_v24  ;;  %v481_v24 = vrot.slane %v472_v23, %v3423_v22 }
  0xc3   : > { %666 = vmatprep.subr.bf16.mxu0 %v2615_v25 }
  0xc4   : > { %908 = vmatpush1.bf16.msra.mxu1 %v2653_v17 }
  0xc5   : > { %1230 = vmatprep.subr.bf16.mxu1 %v2656_v19 }
  0xc6   : > { %667 = vmatpush1.bf16.msra.mxu0 %v2617_v26 }
  0xc7   : > { %668 = vmatprep.subr.bf16.mxu0 %v2618_v27 }
  0xca   : > { %669 = vmatpush1.bf16.msra.mxu0 %v2620_v28 }
  0xcb   : > { %670 = vmatprep.subr.bf16.mxu0 %v2621_v29 }
  0xce   : > { %671 = vmatpush1.bf16.msra.mxu0 %v2623_v30 }
  0xcf   : > { %672 = vmatprep.subr.bf16.mxu0 %v2624_v31 }
  0xd2   : > { %673 = vmatpush1.bf16.msra.mxu0 %v2626_v33  ;;  %v3429_v33 = vsub.s32 0, %v475_v21 }
  0xd3   : > { %674 = vmatprep.subr.bf16.mxu0 %v2627_v34 }
  0xd4   : > { %v3432_v37 = vrot.slane %v472_v23, %v3429_v33 }
  0xd6   : > { %675 = vmatpush1.bf16.msra.mxu0 %v2629_v38 }
  0xd9   : > { %677 = vmatmul.mubr.bf16.vlgmr.msra.gmra.mrb[0].mxu0 %v432_v43 }
  0xda   : > { %686 = vmatprep.mubr.bf16.mxu0 %v437_v46 }
  0xe1   : > { %687 = vmatmul.mubr.bf16.gmra.mrb[4].mxu0 %v433_v51 }
  0xe2   : > { %696 = vmatprep.mubr.bf16.mxu0 %v438_v54 }
  0xe9   : > { %697 = vmatmul.mubr.bf16.gmra.mrb[8].mxu0 %v434_v58 }
  0xea   : > { %706 = vmatprep.mubr.bf16.mxu0 %v439_v60 }
  0xf1   : > { %707 = vmatmul.mubr.bf16.gmra.mrb[12].mxu0 %v435_v63 }
  0xf2   : > { %1513 = vmatprep.mubr.bf16.mxu0 %v3112_v18 }
 0x1ac   : > { %v678_v25 = vpop.f32.mrb[0].mxu0 }
 0x1ad   : > { %v680_v26 = vpop.f32.mrb[1].mxu0  ;;  %v679_v45 = vadd.f32 %v678_v25, %v3432_v37 }
 0x1ae   : > { %v681_v27 = vadd.f32 %v680_v26, %v481_v24  ;;  %v682_v28 = vpop.f32.mrb[2].mxu0 }
 0x1af   : > { %v684_v29 = vpop.f32.mrb[3].mxu0  ;;  %v683_v48 = vadd.f32 %v682_v28, %v3432_v37  ;;  %v2654_v28 = vld [vmem:[#allocation6 + $0x100] ss:$8 sps:$4 sm:$0xff]  }
 0x1b0   : > { %v2368_v30 = vmul.f32 -1.442695, %v681_v27  ;;  %v685_v31 = vadd.f32 %v684_v29, %v481_v24 }
 0x1b2   : > { %2798 = vpow2.f32 %v2368_v30  ;;  %v2369_v34 = vmul.f32 -1.442695, %v685_v31 }
 0x1b4   : > { %2800 = vpow2.f32 %v2369_v34  ;;  %v688_v35 = vpop.f32.mrb[4].mxu0 }
 0x1b5   : > { %v690_v36 = vpop.f32.mrb[5].mxu0  ;;  %v689_v62 = vadd.f32 %v688_v35, %v3432_v37 }
 0x1b6   : > { %v691_v38 = vadd.f32 %v690_v36, %v481_v24  ;;  %v692_v41 = vpop.f32.mrb[6].mxu0  ;;  %v2657_v36 = vld [vmem:[#allocation6 + $0x110] ss:$8 sps:$4 sm:$0xff]  }
 0x1b7   : > { %v694_v42 = vpop.f32.mrb[7].mxu0  ;;  %v693_v1 = vadd.f32 %v692_v41, %v3432_v37 }
 0x1b8   : > { %v2370_v43 = vmul.f32 -1.442695, %v691_v38  ;;  %v695_v44 = vadd.f32 %v694_v42, %v481_v24 }
 0x1ba   : > { %2802 = vpow2.f32 %v2370_v43  ;;  %v2371_v46 = vmul.f32 -1.442695, %v695_v44  ;;  %v2662_v43 = vld [vmem:[#allocation6 + $0x124] ss:$8 sps:$4 sm:$0xff]  }
 0x1bc   : > { %v2799_v47 = vpop.eup %2798  ;;  %2804 = vpow2.f32 %v2371_v46  ;;  %v698_v51 = vpop.f32.mrb[8].mxu0 }
 0x1bd   : > { %v749_v52 = vadd.f32 1.0, %v2799_v47  ;;  %v700_v53 = vpop.f32.mrb[9].mxu0  ;;  %2806 = vtanh.f32 %v679_v45  ;;  %v699_v17 = vadd.f32 %v698_v51, %v3432_v37  ;;  %v2660_v51 = vld [vmem:[#allocation6 + $0x120] ss:$8 sps:$4 sm:$0xff]  }
 0x1be   : > { %v2801_v54 = vpop.eup %2800  ;;  %v701_v55 = vadd.f32 %v700_v53, %v481_v24  ;;  %v702_v56 = vpop.f32.mrb[10].mxu0 }
 0x1bf   : > { %2808 = vrcp.f32 %v749_v52  ;;  %v750_v58 = vadd.f32 1.0, %v2801_v54  ;;  %v704_v59 = vpop.f32.mrb[11].mxu0  ;;  %v703_v25 = vadd.f32 %v702_v56, %v3432_v37  ;;  %v2665_v54 = vld [vmem:[#allocation6 + $0x134] ss:$8 sps:$4 sm:$0xff]  }
 0x1c0   : > { %2810 = vtanh.f32 %v683_v48  ;;  %v2372_v60 = vmul.f32 -1.442695, %v701_v55  ;;  %v705_v61 = vadd.f32 %v704_v59, %v481_v24 }
 0x1c1   : > { %2812 = vrcp.f32 %v750_v58 }
 0x1c2   : > { %2814 = vpow2.f32 %v2372_v60  ;;  %v2373_v63 = vmul.f32 -1.442695, %v705_v61  ;;  %v2668_v61 = vld [vmem:[#allocation6 + $0x144] ss:$8 sps:$4 sm:$0xff]  }
 0x1c4   : > { %v2803_v0 = vpop.eup %2802  ;;  %2816 = vpow2.f32 %v2373_v63  ;;  %v708_v2 = vpop.f32.mrb[12].mxu0 }
 0x1c5   : > { %v751_v3 = vadd.f32 1.0, %v2803_v0  ;;  %v710_v4 = vpop.f32.mrb[13].mxu0  ;;  %2818 = vtanh.f32 %v689_v62  ;;  %v709_v41 = vadd.f32 %v708_v2, %v3432_v37  ;;  %v2666_v0 = vld [vmem:[#allocation6 + $0x140] ss:$8 sps:$4 sm:$0xff]   ;;  %v2671_v2 = vld [vmem:[#allocation6 + $0x154] ss:$8 sps:$4 sm:$0xff]  }
 0x1c6   : > { %v2805_v5 = vpop.eup %2804  ;;  %v711_v6 = vadd.f32 %v710_v4, %v481_v24  ;;  %v712_v7 = vpop.f32.mrb[14].mxu0 }
 0x1c7   : > { %2820 = vrcp.f32 %v751_v3  ;;  %v752_v8 = vadd.f32 1.0, %v2805_v5  ;;  %v714_v9 = vpop.f32.mrb[15].mxu0  ;;  %v2807_v10 = vpop.eup %2806  ;;  %v713_v46 = vadd.f32 %v712_v7, %v3432_v37  ;;  %v2663_v37 = vld [vmem:[#allocation6 + $0x130] ss:$8 sps:$4 sm:$0xff]  }
 0x1c8   : > { %2822 = vtanh.f32 %v693_v1  ;;  %v2374_v11 = vmul.f32 -1.442695, %v711_v6  ;;  %v715_v12 = vadd.f32 %v714_v9, %v481_v24  ;;  %v2659_v24 = vld [vmem:[#allocation6 + $0x114] ss:$8 sps:$4 sm:$0xff]   ;;  %v2669_v5 = vld [vmem:[#allocation6 + $0x150] ss:$8 sps:$4 sm:$0xff]  }
 0x1c9   : > { %v2809_v15 = vpop.eup %2808  ;;  %2824 = vrcp.f32 %v752_v8  ;;  %v2674_v8 = vld [vmem:[#allocation6 + $0x164] ss:$8 sps:$4 sm:$0xff]  }
 0x1ca   : > { %v2811_v16 = vpop.eup %2810  ;;  %2826 = vpow2.f32 %v2374_v11  ;;  %v2375_v19 = vmul.f32 -1.442695, %v715_v12  ;;  %v773_v20 = vmul.f32 %v2809_v15, %v2807_v10  ;;  %v2672_v11 = vld [vmem:[#allocation6 + $0x160] ss:$8 sps:$4 sm:$0xff]   ;;  %v2677_v15 = vld [vmem:[#allocation6 + $0x174] ss:$8 sps:$4 sm:$0xff]  }
 0x1cb   : > { %v2813_v21 = vpop.eup %2812 }
 0x1cc   : > { %v2815_v23 = vpop.eup %2814  ;;  %2828 = vpow2.f32 %v2375_v19  ;;  %v774_v26 = vmul.f32 %v2813_v21, %v2811_v16  ;;  %v2675_v16 = vld [vmem:[#allocation6 + $0x170] ss:$8 sps:$4 sm:$0xff]   ;;  %v2678_v19 = vld [vmem:[#allocation6 + $0x180] ss:$8 sps:$4 sm:$0xff]  }
 0x1cd   : > { %v753_v27 = vadd.f32 1.0, %v2815_v23  ;;  %2830 = vtanh.f32 %v699_v17  ;;  %v2680_v17 = vld [vmem:[#allocation6 + $0x184] ss:$8 sps:$4 sm:$0xff]   ;;  %v2681_v21 = vld [vmem:[#allocation6 + $0x190] ss:$8 sps:$4 sm:$0xff]  }
 0x1ce   : > { %v2817_v29 = vpop.eup %2816  ;;  %v781_v30 = vpack.c.bf16 %v774_v26, %v773_v20  ;;  %v2683_v20 = vld [vmem:[#allocation6 + $0x194] ss:$8 sps:$4 sm:$0xff]   ;;  %v2686_v23 = vld [vmem:[#allocation6 + $0x1a4] ss:$8 sps:$4 sm:$0xff]  }
 0x1cf   : > { %2832 = vrcp.f32 %v753_v27  ;;  %v754_v31 = vadd.f32 1.0, %v2817_v29  ;;  %v2819_v34 = vpop.eup %2818  ;;  %v2689_v26 = vld [vmem:[#allocation6 + $0x1b4] ss:$8 sps:$4 sm:$0xff]   ;;  %v2687_v27 = vld [vmem:[#allocation6 + $0x1b0] ss:$8 sps:$4 sm:$0xff]  }
 0x1d0   : > { %2834 = vtanh.f32 %v703_v25  ;;  %926 = vmatmul.mubr.bf16.vlgmr.msra.gmra.mrb[0].mxu1 %v781_v30  ;;  %v2684_v25 = vld [vmem:[#allocation6 + $0x1a0] ss:$8 sps:$4 sm:$0xff]   ;;  %v2695_v30 = vld [vmem:[#allocation6 + $0x1d4] ss:$8 sps:$4 sm:$0xff]  }
 0x1d1   : > { %v2821_v35 = vpop.eup %2820  ;;  %2836 = vrcp.f32 %v754_v31  ;;  %935 = vmatprep.mubr.bf16.mxu1 %v3112_v18  ;;  %1231 = vmatpush1.bf16.msra.mxu1 %v2654_v28  ;;  %v2692_v28 = vld [vmem:[#allocation6 + $0x1c4] ss:$8 sps:$4 sm:$0xff]   ;;  %v2690_v29 = vld [vmem:[#allocation6 + $0x1c0] ss:$8 sps:$4 sm:$0xff]  }
 0x1d2   : > { %v2823_v38 = vpop.eup %2822  ;;  %v775_v42 = vmul.f32 %v2821_v35, %v2819_v34  ;;  %1232 = vmatprep.subr.bf16.mxu1 %v2659_v24  ;;  %2838 = vtanh.f32 %v709_v41  ;;  %v2693_v24 = vld [vmem:[#allocation6 + $0x1d0] ss:$8 sps:$4 sm:$0xff]   ;;  %v2698_v31 = vld [vmem:[#allocation6 + $0x1e4] ss:$8 sps:$4 sm:$0xff]   ;;  %v2696_v34 = vld [vmem:[#allocation6 + $0x1e0] ss:$8 sps:$4 sm:$0xff]  }
 0x1d3   : > { %v2825_v44 = vpop.eup %2824  ;;  %v2701_v35 = vld [vmem:[#allocation6 + $0x1f4] ss:$8 sps:$4 sm:$0xff]  }
 0x1d4   : > { %v2827_v45 = vpop.eup %2826  ;;  %v776_v47 = vmul.f32 %v2825_v44, %v2823_v38  ;;  %v3448_v38 = vld [vmem:[%s3717_s5] sm:$0x3] }
 0x1d5   : > { %v755_v48 = vadd.f32 1.0, %v2827_v45  ;;  %1233 = vmatpush1.bf16.msra.mxu1 %v2657_v36  ;;  %v2699_v36 = vld [vmem:[#allocation6 + $0x1f0] ss:$8 sps:$4 sm:$0xff]   ;;  %v810_v41 = vrot.slane %v3448_v38, %v3423_v22 }
 0x1d6   : > { %v2829_v52 = vpop.eup %2828  ;;  %v782_v53 = vpack.c.bf16 %v776_v47, %v775_v42  ;;  %1234 = vmatprep.subr.bf16.mxu1 %v2662_v43 }
 0x1d7   : > { %2840 = vrcp.f32 %v755_v48  ;;  %v756_v55 = vadd.f32 1.0, %v2829_v52  ;;  %v2831_v56 = vpop.eup %2830 }
 0x1d8   : > { %2842 = vtanh.f32 %v713_v46  ;;  %936 = vmatmul.mubr.bf16.gmra.mrb[4].mxu1 %v782_v53 }
 0x1d9   : > { %v2833_v58 = vpop.eup %2832  ;;  %2844 = vrcp.f32 %v756_v55  ;;  %945 = vmatprep.mubr.bf16.mxu1 %v3112_v18  ;;  %1235 = vmatpush1.bf16.msra.mxu1 %v2660_v51 }
 0x1da   : > { %v2835_v59 = vpop.eup %2834  ;;  %v777_v60 = vmul.f32 %v2833_v58, %v2831_v56  ;;  %1236 = vmatprep.subr.bf16.mxu1 %v2665_v54 }
 0x1db   : > { %v2837_v62 = vpop.eup %2836 }
 0x1dc   : > { %v778_v63 = vmul.f32 %v2837_v62, %v2835_v59  ;;  %v2839_v3 = vpop.eup %2838 }
 0x1dd   : > { %1237 = vmatpush1.bf16.msra.mxu1 %v2663_v37 }
 0x1de   : > { %v783_v1 = vpack.c.bf16 %v778_v63, %v777_v60  ;;  %1238 = vmatprep.subr.bf16.mxu1 %v2668_v61 }
 0x1e0   : > { %946 = vmatmul.mubr.bf16.gmra.mrb[8].mxu1 %v783_v1 }
 0x1e1   : > { %v2841_v4 = vpop.eup %2840  ;;  %955 = vmatprep.mubr.bf16.mxu1 %v3112_v18  ;;  %1239 = vmatpush1.bf16.msra.mxu1 %v2666_v0 }
 0x1e2   : > { %v2843_v6 = vpop.eup %2842  ;;  %v779_v7 = vmul.f32 %v2841_v4, %v2839_v3  ;;  %1240 = vmatprep.subr.bf16.mxu1 %v2671_v2 }
 0x1e3   : > { %v2845_v9 = vpop.eup %2844 }
 0x1e4   : > { %v780_v10 = vmul.f32 %v2845_v9, %v2843_v6 }
 0x1e5   : > { %1241 = vmatpush1.bf16.msra.mxu1 %v2669_v5 }
 0x1e6   : > { %v784_v12 = vpack.c.bf16 %v780_v10, %v779_v7  ;;  %1242 = vmatprep.subr.bf16.mxu1 %v2674_v8 }
 0x1e8   : > { %956 = vmatmul.mubr.bf16.gmra.mrb[12].mxu1 %v784_v12 }
 0x1e9   : > { %1243 = vmatpush1.bf16.msra.mxu1 %v2672_v11 }
 0x1ea   : > { %1244 = vmatprep.subr.bf16.mxu1 %v2677_v15 }
 0x1ed   : > { %1245 = vmatpush1.bf16.msra.mxu1 %v2675_v16 }
 0x1ee   : > { %1246 = vmatprep.subr.bf16.mxu1 %v2680_v17 }
 0x1f1   : > { %1247 = vmatpush1.bf16.msra.mxu1 %v2678_v19 }
 0x1f2   : > { %1248 = vmatprep.subr.bf16.mxu1 %v2683_v20 }
 0x1f5   : > { %1249 = vmatpush1.bf16.msra.mxu1 %v2681_v21 }
 0x1f6   : > { %1250 = vmatprep.subr.bf16.mxu1 %v2686_v23 }
 0x1f9   : > { %1251 = vmatpush1.bf16.msra.mxu1 %v2684_v25 }
 0x1fa   : > { %1252 = vmatprep.subr.bf16.mxu1 %v2689_v26 }
 0x1fd   : > { %1253 = vmatpush1.bf16.msra.mxu1 %v2687_v27 }
 0x1fe   : > { %1254 = vmatprep.subr.bf16.mxu1 %v2692_v28 }
 0x201   : > { %1255 = vmatpush1.bf16.msra.mxu1 %v2690_v29 }
 0x202   : > { %1256 = vmatprep.subr.bf16.mxu1 %v2695_v30 }
 0x205   : > { %1257 = vmatpush1.bf16.msra.mxu1 %v2693_v24 }
 0x206   : > { %1258 = vmatprep.subr.bf16.mxu1 %v2698_v31 }
 0x209   : > { %1259 = vmatpush1.bf16.msra.mxu1 %v2696_v34 }
 0x20a   : > { %1260 = vmatprep.subr.bf16.mxu1 %v2701_v35  ;;  %v2702_v35 = vld [vmem:[#allocation7 + $0x80] ss:$8 sps:$4 sm:$0xff]  }
 0x20d   : > { %1261 = vmatpush1.bf16.msra.mxu1 %v2699_v36  ;;  %v2707_v36 = vld [vmem:[#allocation7 + $0x94] ss:$8 sps:$4 sm:$0xff]  }
 0x2a3   : > { %v3452_v42 = vpop.f32.mrb[0].mxu1 }
 0x2a4   : > { %v929_v43 = vpop.f32.mrb[1].mxu1 }
 0x2a5   : > { %v930_v44 = vadd.f32 %v929_v43, %v810_v41  ;;  %v3454_v45 = vpop.f32.mrb[2].mxu1  ;;  %v2710_v43 = vld [vmem:[#allocation7 + $0xa4] ss:$8 sps:$4 sm:$0xff]  }
 0x2a6   : > { %v933_v46 = vpop.f32.mrb[3].mxu1 }
 0x2a7   : > { %v934_v47 = vadd.f32 %v933_v46, %v810_v41  ;;  %v3457_v48 = vadd.f32 %v930_v44, %v3374_v13  ;;  %v2708_v44 = vld [vmem:[#allocation7 + $0xa0] ss:$8 sps:$4 sm:$0xff]   ;;  %v2713_v46 = vld [vmem:[#allocation7 + $0xb4] ss:$8 sps:$4 sm:$0xff]  }
 0x2a9   : > { %v3460_v51 = vadd.f32 %v934_v47, %v3377_v14  ;;  %v993_v4 = vrot.slane %v3457_v48, 6  ;;  %v2711_v47 = vld [vmem:[#allocation7 + $0xb0] ss:$8 sps:$4 sm:$0xff]  }
 0x2ab   : > { %v3462_v52 = vpop.f32.mrb[4].mxu1  ;;  %v1020_v53 = vpack.c.bf16 %v3460_v51, %v3457_v48  ;;  %v994_v1 = vrot.slane %v3460_v51, 6 }
 0x2ac   : > { %v939_v54 = vpop.f32.mrb[5].mxu1 }
 0x2ad   : > { %v3466_v55 = vpop.f32.mrb[6].mxu1  ;;  %1262 = vmatprep.mubr.bf16.mxu1 %v1020_v53  ;;  %v940_v2 = vadd.f32 %v939_v54, %v810_v41  ;;  %v995_v7 = vsel %vm992_vm1, %v993_v4, %v994_v1  ;;  %v2716_v53 = vld [vmem:[#allocation7 + $0xc4] ss:$8 sps:$4 sm:$0xff]   ;;  %v2714_v54 = vld [vmem:[#allocation7 + $0xc0] ss:$8 sps:$4 sm:$0xff]  }
 0x2ae   : > { %v943_v56 = vpop.f32.mrb[7].mxu1 }
 0x2af   : > { %v944_v63 = vadd.f32 %v943_v56, %v810_v41  ;;  %v3487_v8 = vadd.f32 %v940_v2, %v3388_v39  ;;  %v2719_v56 = vld [vmem:[#allocation7 + $0xd4] ss:$8 sps:$4 sm:$0xff]  }
 0x2b1   : > { %v3482_v5 = vadd.f32 %v944_v63, %v3391_v40  ;;  %v996_v40 = vrot.slane %v3487_v8, 6  ;;  %v2723_v63 = vld [vmem:[#allocation7 + $0xf0] ss:$8 sps:$4 sm:$0xff]  }
 0x2b3   : > { %v3468_v58 = vpop.f32.mrb[8].mxu1  ;;  %v998_v11 = vrot.slane %v3482_v5, 6  ;;  %v1021_v12 = vpack.c.bf16 %v3482_v5, %v3487_v8  ;;  %v997_v19 = vsel %vm992_vm1, %v994_v1, %v996_v40  ;;  %v2392_v1 = vld [vmem:[%s3715_s3 + $0x2] sm:$0x3] }
 0x2b4   : > { %v949_v37 = vpop.f32.mrb[9].mxu1  ;;  %v1067_v2 = vrot.slane %v2392_v1, %v3423_v22 }
 0x2b5   : > { %v3470_v59 = vpop.f32.mrb[10].mxu1  ;;  %v950_v15 = vadd.f32 %v949_v37, %v810_v41  ;;  %v999_v39 = vsel %vm992_vm1, %v996_v40, %v998_v11  ;;  %v2717_v37 = vld [vmem:[#allocation7 + $0xd0] ss:$8 sps:$4 sm:$0xff]  }
 0x2b6   : > { %v953_v13 = vpop.f32.mrb[11].mxu1  ;;  %v1017_v20 = vpack.c.bf16 %v999_v39, %v997_v19  ;;  %v3522_v39 = vrot.slane %v2392_v1, %v3429_v33 }
 0x2b7   : > { %v3499_v17 = vadd.f32 %v950_v15, %v3402_v49 }
 0x2b9   : > { %v1000_v25 = vrot.slane %v3499_v17, 6 }
 0x2bb   : > { %v3472_v60 = vpop.f32.mrb[12].mxu1  ;;  %v1001_v49 = vsel %vm992_vm1, %v998_v11, %v1000_v25 }
 0x2bc   : > { %v959_v14 = vpop.f32.mrb[13].mxu1 }
 0x2bd   : > { %v3474_v61 = vpop.f32.mrb[14].mxu1  ;;  %v960_v26 = vadd.f32 %v959_v14, %v810_v41  ;;  %v2720_v14 = vld [vmem:[#allocation7 + $0xe0] ss:$8 sps:$4 sm:$0xff]  }
 0x2be   : > { %v963_v62 = vpop.f32.mrb[15].mxu1 }
 0x2bf   : > { %v964_v0 = vadd.f32 %v963_v62, %v810_v41  ;;  %v3508_v27 = vadd.f32 %v960_v26, %v3414_v57  ;;  %v2704_v57 = vld [vmem:[#allocation7 + $0x84] ss:$8 sps:$4 sm:$0xff]   ;;  %v2725_v62 = vld [vmem:[#allocation7 + $0xf4] ss:$8 sps:$4 sm:$0xff]  }
 0x2c0   : > { %1481 = vmatprep.subr.bf16.mxu0 %v2704_v57 }
 0x2c1   : > { %v3478_v3 = vadd.f32 %v964_v0, %v3382_v32  ;;  %v954_v32 = vadd.f32 %v953_v13, %v810_v41  ;;  %v1004_v30 = vrot.slane %v3508_v27, 6  ;;  %1482 = vmatpush1.bf16.msra.mxu0 %v2702_v35  ;;  %v2705_v41 = vld [vmem:[#allocation7 + $0x90] ss:$8 sps:$4 sm:$0xff]   ;;  %v2722_v13 = vld [vmem:[#allocation7 + $0xe4] ss:$8 sps:$4 sm:$0xff]  }
 0x2c2   : > { %1483 = vmatprep.subr.bf16.mxu0 %v2707_v36  ;;  %v2728_v0 = vld [vmem:[#allocation6 + $0x204] ss:$8 sps:$4 sm:$0xff]  }
 0x2c3   : > { %v983_v6 = vrot.slane %v3478_v3, 6  ;;  %v3495_v16 = vadd.f32 %v954_v32, %v3405_v50  ;;  %v1023_v29 = vpack.c.bf16 %v3478_v3, %v3508_v27 }
 0x2c5   : > { %v1015_v9 = vsel %vm992_vm1, %v983_v6, %v993_v4  ;;  %v1002_v21 = vrot.slane %v3495_v16, 6  ;;  %v1022_v23 = vpack.c.bf16 %v3495_v16, %v3499_v17  ;;  %v1006_v24 = vsel %vm992_vm1, %v1004_v30, %v983_v6  ;;  %1484 = vmatpush1.bf16.msra.mxu0 %v2705_v41 }
 0x2c6   : > { %v1016_v10 = vpack.c.bf16 %v995_v7, %v1015_v9  ;;  %1485 = vmatprep.subr.bf16.mxu0 %v2710_v43 }
 0x2c7   : > { %v1003_v50 = vsel %vm992_vm1, %v1000_v25, %v1002_v21  ;;  %v1005_v31 = vsel %vm992_vm1, %v1002_v21, %v1004_v30 }
 0x2c8   : > { %1263 = vmatmul.mubr.bf16.vlgmr.msra.gmra.mrb[16].mxu1 %v1016_v10  ;;  %v1018_v28 = vpack.c.bf16 %v1003_v50, %v1001_v49  ;;  %v1019_v34 = vpack.c.bf16 %v1006_v24, %v1005_v31 }
 0x2c9   : > { %1272 = vmatprep.mubr.bf16.mxu1 %v1021_v12  ;;  %1486 = vmatpush1.bf16.msra.mxu0 %v2708_v44 }
 0x2ca   : > { %1487 = vmatprep.subr.bf16.mxu0 %v2713_v46 }
 0x2cd   : > { %1488 = vmatpush1.bf16.msra.mxu0 %v2711_v47 }
 0x2ce   : > { %1489 = vmatprep.subr.bf16.mxu0 %v2716_v53 }
 0x2d0   : > { %1273 = vmatmul.mubr.bf16.gmra.mrb[20].mxu1 %v1017_v20 }
 0x2d1   : > { %1282 = vmatprep.mubr.bf16.mxu1 %v1022_v23  ;;  %1490 = vmatpush1.bf16.msra.mxu0 %v2714_v54 }
 0x2d2   : > { %1491 = vmatprep.subr.bf16.mxu0 %v2719_v56 }
 0x2d5   : > { %1492 = vmatpush1.bf16.msra.mxu0 %v2717_v37 }
 0x2d6   : > { %1493 = vmatprep.subr.bf16.mxu0 %v2722_v13 }
 0x2d8   : > { %1283 = vmatmul.mubr.bf16.gmra.mrb[24].mxu1 %v1018_v28 }
 0x2d9   : > { %1292 = vmatprep.mubr.bf16.mxu1 %v1023_v29  ;;  %1494 = vmatpush1.bf16.msra.mxu0 %v2720_v14 }
 0x2da   : > { %1495 = vmatprep.subr.bf16.mxu0 %v2725_v62 }
 0x2dd   : > { %1496 = vmatpush1.bf16.msra.mxu0 %v2723_v63 }
 0x2de   : > { %1818 = vmatprep.subr.bf16.mxu0 %v2728_v0 }
 0x2e0   : > { %1293 = vmatmul.mubr.bf16.gmra.mrb[28].mxu1 %v1019_v34 }
 0x2e1   : > { %2101 = vmatprep.mubr.bf16.mxu1 %v3112_v18 }
 0x39b   : > { %v1264_v4 = vpop.f32.mrb[16].mxu1 }
 0x39c   : > { %v1266_v6 = vpop.f32.mrb[17].mxu1  ;;  %v1265_v26 = vadd.f32 %v1264_v4, %v3522_v39 }
 0x39d   : > { %v1267_v7 = vadd.f32 %v1266_v6, %v1067_v2  ;;  %v1268_v9 = vpop.f32.mrb[18].mxu1 }
 0x39e   : > { %v1270_v10 = vpop.f32.mrb[19].mxu1  ;;  %v1269_v28 = vadd.f32 %v1268_v9, %v3522_v39 }
 0x39f   : > { %v2425_v11 = vmul.f32 -1.442695, %v1267_v7  ;;  %v1271_v32 = vadd.f32 %v1270_v10, %v1067_v2 }
 0x3a1   : > { %2846 = vpow2.f32 %v2425_v11  ;;  %v2426_v12 = vmul.f32 -1.442695, %v1271_v32 }
 0x3a3   : > { %2848 = vpow2.f32 %v2426_v12  ;;  %v1274_v40 = vpop.f32.mrb[20].mxu1 }
 0x3a4   : > { %v1276_v15 = vpop.f32.mrb[21].mxu1  ;;  %v1275_v44 = vadd.f32 %v1274_v40, %v3522_v39 }
 0x3a5   : > { %v1277_v19 = vadd.f32 %v1276_v15, %v1067_v2  ;;  %v1278_v20 = vpop.f32.mrb[22].mxu1 }
 0x3a6   : > { %v1280_v21 = vpop.f32.mrb[23].mxu1  ;;  %v1279_v53 = vadd.f32 %v1278_v20, %v3522_v39 }
 0x3a7   : > { %v2427_v23 = vmul.f32 -1.442695, %v1277_v19  ;;  %v1281_v25 = vadd.f32 %v1280_v21, %v1067_v2  ;;  %v2726_v21 = vld [vmem:[#allocation6 + $0x200] ss:$8 sps:$4 sm:$0xff]  }
 0x3a9   : > { %2850 = vpow2.f32 %v2427_v23  ;;  %v2428_v50 = vmul.f32 -1.442695, %v1281_v25 }
 0x3ab   : > { %v2847_v49 = vpop.eup %2846  ;;  %2852 = vpow2.f32 %v2428_v50  ;;  %v1284_v29 = vpop.f32.mrb[24].mxu1 }
 0x3ac   : > { %v1335_v30 = vadd.f32 1.0, %v2847_v49  ;;  %v1286_v24 = vpop.f32.mrb[25].mxu1  ;;  %2854 = vtanh.f32 %v1265_v26  ;;  %v1285_v10 = vadd.f32 %v1284_v29, %v3522_v39 }
 0x3ad   : > { %v2849_v31 = vpop.eup %2848  ;;  %v1287_v34 = vadd.f32 %v1286_v24, %v1067_v2  ;;  %v1288_v57 = vpop.f32.mrb[26].mxu1 }
 0x3ae   : > { %2856 = vrcp.f32 %v1335_v30  ;;  %v1336_v35 = vadd.f32 1.0, %v2849_v31  ;;  %v1290_v36 = vpop.f32.mrb[27].mxu1  ;;  %v1289_v15 = vadd.f32 %v1288_v57, %v3522_v39  ;;  %v2734_v31 = vld [vmem:[#allocation6 + $0x224] ss:$8 sps:$4 sm:$0xff]  }
 0x3af   : > { %2858 = vtanh.f32 %v1269_v28  ;;  %v2429_v41 = vmul.f32 -1.442695, %v1287_v34  ;;  %v1291_v43 = vadd.f32 %v1290_v36, %v1067_v2  ;;  %v2729_v28 = vld [vmem:[#allocation6 + $0x210] ss:$8 sps:$4 sm:$0xff]  }
 0x3b0   : > { %2860 = vrcp.f32 %v1336_v35 }
 0x3b1   : > { %2862 = vpow2.f32 %v2429_v41  ;;  %v2430_v46 = vmul.f32 -1.442695, %v1291_v43  ;;  %v2732_v43 = vld [vmem:[#allocation6 + $0x220] ss:$8 sps:$4 sm:$0xff]  }
 0x3b3   : > { %v2851_v47 = vpop.eup %2850  ;;  %2864 = vpow2.f32 %v2430_v46  ;;  %v1294_v54 = vpop.f32.mrb[28].mxu1 }
 0x3b4   : > { %v1337_v56 = vadd.f32 1.0, %v2851_v47  ;;  %v1296_v37 = vpop.f32.mrb[29].mxu1  ;;  %2866 = vtanh.f32 %v1275_v44  ;;  %v1295_v30 = vadd.f32 %v1294_v54, %v3522_v39  ;;  %v2737_v47 = vld [vmem:[#allocation6 + $0x234] ss:$8 sps:$4 sm:$0xff]  }
 0x3b5   : > { %v2853_v13 = vpop.eup %2852  ;;  %v1297_v14 = vadd.f32 %v1296_v37, %v1067_v2  ;;  %v1298_v62 = vpop.f32.mrb[30].mxu1 }
 0x3b6   : > { %2868 = vrcp.f32 %v1337_v56  ;;  %v1338_v63 = vadd.f32 1.0, %v2853_v13  ;;  %v1300_v0 = vpop.f32.mrb[31].mxu1  ;;  %v2855_v1 = vpop.eup %2854  ;;  %v1299_v35 = vadd.f32 %v1298_v62, %v3522_v39  ;;  %v2735_v39 = vld [vmem:[#allocation6 + $0x230] ss:$8 sps:$4 sm:$0xff]  }
 0x3b7   : > { %2870 = vtanh.f32 %v1279_v53  ;;  %v2431_v4 = vmul.f32 -1.442695, %v1297_v14  ;;  %v1301_v6 = vadd.f32 %v1300_v0, %v1067_v2  ;;  %v2731_v2 = vld [vmem:[#allocation6 + $0x214] ss:$8 sps:$4 sm:$0xff]   ;;  %v2740_v14 = vld [vmem:[#allocation6 + $0x244] ss:$8 sps:$4 sm:$0xff]  }
 0x3b8   : > { %v2857_v7 = vpop.eup %2856  ;;  %2872 = vrcp.f32 %v1338_v63  ;;  %v2738_v0 = vld [vmem:[#allocation6 + $0x240] ss:$8 sps:$4 sm:$0xff]  }
 0x3b9   : > { %v2859_v9 = vpop.eup %2858  ;;  %2874 = vpow2.f32 %v2431_v4  ;;  %v2432_v11 = vmul.f32 -1.442695, %v1301_v6  ;;  %v1359_v32 = vmul.f32 %v2857_v7, %v2855_v1  ;;  %v2743_v4 = vld [vmem:[#allocation6 + $0x254] ss:$8 sps:$4 sm:$0xff]  }
 0x3ba   : > { %v2861_v12 = vpop.eup %2860 }
 0x3bb   : > { %v2863_v40 = vpop.eup %2862  ;;  %2876 = vpow2.f32 %v2432_v11  ;;  %v1360_v19 = vmul.f32 %v2861_v12, %v2859_v9  ;;  %v2741_v9 = vld [vmem:[#allocation6 + $0x250] ss:$8 sps:$4 sm:$0xff]  }
 0x3bc   : > { %v1339_v20 = vadd.f32 1.0, %v2863_v40  ;;  %2878 = vtanh.f32 %v1285_v10 }
 0x3bd   : > { %v2865_v23 = vpop.eup %2864  ;;  %v1367_v25 = vpack.c.bf16 %v1360_v19, %v1359_v32  ;;  %v2746_v32 = vld [vmem:[#allocation6 + $0x264] ss:$8 sps:$4 sm:$0xff]  }
 0x3be   : > { %2880 = vrcp.f32 %v1339_v20  ;;  %v1340_v26 = vadd.f32 1.0, %v2865_v23  ;;  %v2867_v50 = vpop.eup %2866  ;;  %v2749_v20 = vld [vmem:[#allocation6 + $0x274] ss:$8 sps:$4 sm:$0xff]   ;;  %v2752_v23 = vld [vmem:[#allocation6 + $0x284] ss:$8 sps:$4 sm:$0xff]  }
 0x3bf   : > { %2882 = vtanh.f32 %v1289_v15  ;;  %1514 = vmatmul.mubr.bf16.vlgmr.msra.gmra.mrb[16].mxu0 %v1367_v25  ;;  %v2744_v15 = vld [vmem:[#allocation6 + $0x260] ss:$8 sps:$4 sm:$0xff]  }
 0x3c0   : > { %v2869_v49 = vpop.eup %2868  ;;  %2884 = vrcp.f32 %v1340_v26  ;;  %1523 = vmatprep.mubr.bf16.mxu0 %v3112_v18  ;;  %1819 = vmatpush1.bf16.msra.mxu0 %v2726_v21  ;;  %v2747_v21 = vld [vmem:[#allocation6 + $0x270] ss:$8 sps:$4 sm:$0xff]   ;;  %v2750_v25 = vld [vmem:[#allocation6 + $0x280] ss:$8 sps:$4 sm:$0xff]  }
 0x3c1   : > { %v2871_v29 = vpop.eup %2870  ;;  %v1361_v24 = vmul.f32 %v2869_v49, %v2867_v50  ;;  %1820 = vmatprep.subr.bf16.mxu0 %v2731_v2  ;;  %2886 = vtanh.f32 %v1295_v30  ;;  %v2755_v2 = vld [vmem:[#allocation6 + $0x294] ss:$8 sps:$4 sm:$0xff]   ;;  %v2753_v26 = vld [vmem:[#allocation6 + $0x290] ss:$8 sps:$4 sm:$0xff]   ;;  %v2758_v50 = vld [vmem:[#allocation6 + $0x2a4] ss:$8 sps:$4 sm:$0xff]  }
 0x3c2   : > { %v2873_v34 = vpop.eup %2872  ;;  %v2756_v49 = vld [vmem:[#allocation6 + $0x2a0] ss:$8 sps:$4 sm:$0xff]   ;;  %v2764_v30 = vld [vmem:[#allocation6 + $0x2c4] ss:$8 sps:$4 sm:$0xff]  }
 0x3c3   : > { %v2875_v57 = vpop.eup %2874  ;;  %v1362_v36 = vmul.f32 %v2873_v34, %v2871_v29  ;;  %v2759_v29 = vld [vmem:[#allocation6 + $0x2b0] ss:$8 sps:$4 sm:$0xff]  }
 0x3c4   : > { %v1341_v41 = vadd.f32 1.0, %v2875_v57  ;;  %1821 = vmatpush1.bf16.msra.mxu0 %v2729_v28  ;;  %v2761_v28 = vld [vmem:[#allocation6 + $0x2b4] ss:$8 sps:$4 sm:$0xff]   ;;  %v2765_v34 = vld [vmem:[#allocation6 + $0x2d0] ss:$8 sps:$4 sm:$0xff]  }
 0x3c5   : > { %v2877_v44 = vpop.eup %2876  ;;  %v1368_v46 = vpack.c.bf16 %v1362_v36, %v1361_v24  ;;  %1822 = vmatprep.subr.bf16.mxu0 %v2734_v31  ;;  %v2762_v24 = vld [vmem:[#allocation6 + $0x2c0] ss:$8 sps:$4 sm:$0xff]   ;;  %v2767_v31 = vld [vmem:[#allocation6 + $0x2d4] ss:$8 sps:$4 sm:$0xff]   ;;  %v2770_v57 = vld [vmem:[#allocation6 + $0x2e4] ss:$8 sps:$4 sm:$0xff]  }
 0x3c6   : > { %2888 = vrcp.f32 %v1341_v41  ;;  %v1342_v53 = vadd.f32 1.0, %v2877_v44  ;;  %v2879_v56 = vpop.eup %2878  ;;  %v2773_v36 = vld [vmem:[#allocation6 + $0x2f4] ss:$8 sps:$4 sm:$0xff]   ;;  %v2771_v41 = vld [vmem:[#allocation6 + $0x2f0] ss:$8 sps:$4 sm:$0xff]  }
 0x3c7   : > { %2890 = vtanh.f32 %v1299_v35  ;;  %1524 = vmatmul.mubr.bf16.gmra.mrb[20].mxu0 %v1368_v46  ;;  %v2768_v35 = vld [vmem:[#allocation6 + $0x2e0] ss:$8 sps:$4 sm:$0xff]  }
 0x3c8   : > { %v2881_v54 = vpop.eup %2880  ;;  %2892 = vrcp.f32 %v1342_v53  ;;  %1533 = vmatprep.mubr.bf16.mxu0 %v3112_v18  ;;  %1823 = vmatpush1.bf16.msra.mxu0 %v2732_v43  ;;  %v806_v43 = vrot.slane %v3448_v38, %v3429_v33  ;;  %v2433_v44 = vld [vmem:[%s3717_s5 + $0x2] sm:$0x3] }
 0x3c9   : > { %v2883_v37 = vpop.eup %2882  ;;  %v1363_v13 = vmul.f32 %v2881_v54, %v2879_v56  ;;  %1824 = vmatprep.subr.bf16.mxu0 %v2737_v47  ;;  %v1394_v47 = vrot.slane %v2433_v44, %v3429_v33  ;;  %v390_v53 = vld [vmem:[%s3359_s10] sm:$0xff]  ;;  %v3544_v56 = vrot.slane %v2433_v44, %v3423_v22  ;;  %v396_v44 = vld [vmem:[%s3359_s10 + $0x30] sm:$0xff] }
 0x3ca   : > { %v2885_v62 = vpop.eup %2884  ;;  %v928_v46 = vadd.f32 %v3452_v42, %v806_v43  ;;  %v932_v54 = vadd.f32 %v3454_v45, %v806_v43  ;;  %v392_v45 = vld [vmem:[%s3359_s10 + $0x10] sm:$0xff] }
 0x3cb   : > { %v1364_v63 = vmul.f32 %v2885_v62, %v2883_v37  ;;  %v2887_v6 = vpop.eup %2886 }
 0x3cc   : > { %1825 = vmatpush1.bf16.msra.mxu0 %v2735_v39  ;;  %v391_v39 = vld [vmem:[%s3359_s10 + $0x8] sm:$0xff] }
 0x3cd   : > { %v1369_v1 = vpack.c.bf16 %v1364_v63, %v1363_v13  ;;  %1826 = vmatprep.subr.bf16.mxu0 %v2740_v14  ;;  %v966_v13 = vadd.f32 %v928_v46, %v390_v53  ;;  %v962_v46 = vadd.f32 %v3474_v61, %v806_v43  ;;  %v397_v53 = vld [vmem:[%s3359_s10 + $0x38] sm:$0xff] }
 0x3cf   : > { %1534 = vmatmul.mubr.bf16.gmra.mrb[24].mxu0 %v1369_v1 }
 0x3d0   : > { %v2889_v7 = vpop.eup %2888  ;;  %1543 = vmatprep.mubr.bf16.mxu0 %v3112_v18  ;;  %1827 = vmatpush1.bf16.msra.mxu0 %v2738_v0  ;;  %v967_v0 = vadd.f32 %v932_v54, %v391_v39 }
 0x3d1   : > { %v2891_v10 = vpop.eup %2890  ;;  %v1365_v11 = vmul.f32 %v2889_v7, %v2887_v6  ;;  %1828 = vmatprep.subr.bf16.mxu0 %v2743_v4  ;;  %v938_v7 = vadd.f32 %v3462_v52, %v806_v43 }
 0x3d2   : > { %v2893_v12 = vpop.eup %2892 }
 0x3d3   : > { %v1366_v40 = vmul.f32 %v2893_v12, %v2891_v10  ;;  %v393_v12 = vld [vmem:[%s3359_s10 + $0x18] sm:$0xff] }
 0x3d4   : > { %1829 = vmatpush1.bf16.msra.mxu0 %v2741_v9 }
 0x3d5   : > { %v1370_v19 = vpack.c.bf16 %v1366_v40, %v1365_v11  ;;  %1830 = vmatprep.subr.bf16.mxu0 %v2746_v32  ;;  %v942_v32 = vadd.f32 %v3466_v55, %v806_v43 }
 0x3d7   : > { %1544 = vmatmul.mubr.bf16.gmra.mrb[28].mxu0 %v1370_v19  ;;  %v968_v19 = vadd.f32 %v938_v7, %v392_v45 }
 0x3d8   : > { %1831 = vmatpush1.bf16.msra.mxu0 %v2744_v15 }
 0x3d9   : > { %1832 = vmatprep.subr.bf16.mxu0 %v2749_v20 }
 0x3dc   : > { %1833 = vmatpush1.bf16.msra.mxu0 %v2747_v21 }
 0x3dd   : > { %1834 = vmatprep.subr.bf16.mxu0 %v2752_v23  ;;  %v969_v23 = vadd.f32 %v942_v32, %v393_v12 }
 0x3e0   : > { %1835 = vmatpush1.bf16.msra.mxu0 %v2750_v25 }
 0x3e1   : > { %1836 = vmatprep.subr.bf16.mxu0 %v2755_v2  ;;  %v948_v2 = vadd.f32 %v3468_v58, %v806_v43  ;;  %v958_v58 = vadd.f32 %v3472_v60, %v806_v43 }
 0x3e3   : > { %v972_v54 = vadd.f32 %v958_v58, %v396_v44  ;;  %v2782_v58 = vld [vmem:[#allocation7 + $0x124] ss:$8 sps:$4 sm:$0xff]   ;;  %v2780_v44 = vld [vmem:[#allocation7 + $0x120] ss:$8 sps:$4 sm:$0xff]  }
 0x3e4   : > { %1837 = vmatpush1.bf16.msra.mxu0 %v2753_v26  ;;  %v394_v26 = vld [vmem:[%s3359_s10 + $0x20] sm:$0xff] }
 0x3e5   : > { %1838 = vmatprep.subr.bf16.mxu0 %v2758_v50  ;;  %v952_v50 = vadd.f32 %v3470_v59, %v806_v43 }
 0x3e8   : > { %1839 = vmatpush1.bf16.msra.mxu0 %v2756_v49  ;;  %v395_v49 = vld [vmem:[%s3359_s10 + $0x28] sm:$0xff] }
 0x3e9   : > { %1840 = vmatprep.subr.bf16.mxu0 %v2761_v28 }
 0x3ec   : > { %1841 = vmatpush1.bf16.msra.mxu0 %v2759_v29  ;;  %v970_v29 = vadd.f32 %v948_v2, %v394_v26 }
 0x3ed   : > { %1842 = vmatprep.subr.bf16.mxu0 %v2764_v30 }
 0x3f0   : > { %1843 = vmatpush1.bf16.msra.mxu0 %v2762_v24 }
 0x3f1   : > { %1844 = vmatprep.subr.bf16.mxu0 %v2767_v31 }
 0x3f4   : > { %1845 = vmatpush1.bf16.msra.mxu0 %v2765_v34  ;;  %v971_v34 = vadd.f32 %v952_v50, %v395_v49 }
 0x3f5   : > { %1846 = vmatprep.subr.bf16.mxu0 %v2770_v57 }
 0x3f8   : > { %1847 = vmatpush1.bf16.msra.mxu0 %v2768_v35 }
 0x3f9   : > { %1848 = vmatprep.subr.bf16.mxu0 %v2773_v36 }
 0x3fc   : > { %1849 = vmatpush1.bf16.msra.mxu0 %v2771_v41 }
 0x492   : > { %v1515_v37 = vpop.f32.mrb[16].mxu0 }
 0x493   : > { %v1516_v38 = vadd.f32 %v1515_v37, %v1394_v47  ;;  %v1517_v14 = vpop.f32.mrb[17].mxu0 }
 0x494   : > { %v1518_v62 = vadd.f32 %v1517_v14, %v3544_v56  ;;  %v1519_v63 = vpop.f32.mrb[18].mxu0 }
 0x495   : > { %v3549_v42 = vadd.f32 %v1516_v38, %v966_v13  ;;  %v1520_v1 = vadd.f32 %v1519_v63, %v1394_v47  ;;  %v1521_v4 = vpop.f32.mrb[19].mxu0  ;;  %v973_v38 = vadd.f32 %v962_v46, %v397_v53  ;;  %v2785_v46 = vld [vmem:[#allocation7 + $0x134] ss:$8 sps:$4 sm:$0xff]   ;;  %v2783_v53 = vld [vmem:[#allocation7 + $0x130] ss:$8 sps:$4 sm:$0xff]  }
 0x496   : > { %v1522_v6 = vadd.f32 %v1521_v4, %v3544_v56  ;;  %v3557_v10 = vadd.f32 %v1518_v62, %v3457_v48 }
 0x497   : > { %v3553_v9 = vadd.f32 %v1520_v1, %v967_v0 }
 0x498   : > { %v3560_v11 = vadd.f32 %v1522_v6, %v3460_v51  ;;  %v1581_v6 = vrot.slane %v3557_v10, 4 }
 0x49a   : > { %v1525_v40 = vpop.f32.mrb[20].mxu0  ;;  %v1608_v15 = vpack.c.bf16 %v3560_v11, %v3557_v10  ;;  %v1582_v4 = vrot.slane %v3560_v11, 4 }
 0x49b   : > { %v1526_v52 = vadd.f32 %v1525_v40, %v1394_v47  ;;  %v1527_v20 = vpop.f32.mrb[21].mxu0 }
 0x49c   : > { %v1529_v21 = vpop.f32.mrb[22].mxu0  ;;  %1850 = vmatprep.mubr.bf16.mxu0 %v1608_v15  ;;  %v1528_v61 = vadd.f32 %v1527_v20, %v3544_v56  ;;  %v1583_v45 = vsel %vm1580_vm2, %v1581_v6, %v1582_v4 }
 0x49d   : > { %v3566_v48 = vadd.f32 %v1526_v52, %v968_v19  ;;  %v1530_v25 = vadd.f32 %v1529_v21, %v1394_v47  ;;  %v1531_v51 = vpop.f32.mrb[23].mxu0 }
 0x49e   : > { %v1532_v0 = vadd.f32 %v1531_v51, %v3544_v56  ;;  %v3600_v32 = vadd.f32 %v1528_v61, %v3487_v8 }
 0x49f   : > { %v3569_v55 = vadd.f32 %v1530_v25, %v969_v23 }
 0x4a0   : > { %v3595_v7 = vadd.f32 %v1532_v0, %v3482_v5  ;;  %v1584_v5 = vrot.slane %v3600_v32, 4  ;;  %v2450_v0 = vld [vmem:[%s3715_s3 + $0x4] sm:$0x3] }
 0x4a2   : > { %v1535_v28 = vpop.f32.mrb[24].mxu0  ;;  %v1586_v15 = vrot.slane %v3595_v7, 4  ;;  %v1609_v19 = vpack.c.bf16 %v3595_v7, %v3600_v32  ;;  %v1585_v23 = vsel %vm1580_vm2, %v1582_v4, %v1584_v5 }
 0x4a3   : > { %v1536_v30 = vadd.f32 %v1535_v28, %v1394_v47  ;;  %v1537_v24 = vpop.f32.mrb[25].mxu0 }
 0x4a4   : > { %v1539_v31 = vpop.f32.mrb[26].mxu0  ;;  %v1538_v52 = vadd.f32 %v1537_v24, %v3544_v56  ;;  %v1587_v8 = vsel %vm1580_vm2, %v1584_v5, %v1586_v15  ;;  %v3637_v5 = vrot.slane %v2450_v0, %v3429_v33 }
 0x4a5   : > { %v3574_v57 = vadd.f32 %v1536_v30, %v970_v29  ;;  %v1540_v35 = vadd.f32 %v1539_v31, %v1394_v47  ;;  %v1541_v36 = vpop.f32.mrb[27].mxu0  ;;  %v1605_v25 = vpack.c.bf16 %v1587_v8, %v1585_v23 }
 0x4a6   : > { %v3614_v21 = vadd.f32 %v1538_v52, %v3499_v17 }
 0x4a7   : > { %v3577_v41 = vadd.f32 %v1540_v35, %v971_v34  ;;  %v2776_v34 = vld [vmem:[#allocation7 + $0x104] ss:$8 sps:$4 sm:$0xff]   ;;  %v2774_v35 = vld [vmem:[#allocation7 + $0x100] ss:$8 sps:$4 sm:$0xff]  }
 0x4a8   : > { %v1588_v26 = vrot.slane %v3614_v21, 4  ;;  %2069 = vmatprep.subr.bf16.mxu1 %v2776_v34 }
 0x4a9   : > { %2070 = vmatpush1.bf16.msra.mxu1 %v2774_v35 }
 0x4aa   : > { %v1545_v59 = vpop.f32.mrb[28].mxu0  ;;  %v1589_v17 = vsel %vm1580_vm2, %v1586_v15, %v1588_v26 }
 0x4ab   : > { %v1546_v39 = vadd.f32 %v1545_v59, %v1394_v47  ;;  %v1547_v37 = vpop.f32.mrb[29].mxu0  ;;  %v2788_v59 = vld [vmem:[#allocation7 + $0x144] ss:$8 sps:$4 sm:$0xff]  }
 0x4ac   : > { %v1549_v13 = vpop.f32.mrb[30].mxu0  ;;  %v1548_v50 = vadd.f32 %v1547_v37, %v3544_v56  ;;  %v2789_v37 = vld [vmem:[#allocation7 + $0x150] ss:$8 sps:$4 sm:$0xff]  }
 0x4ad   : > { %v3582_v14 = vadd.f32 %v1546_v39, %v972_v54  ;;  %v1550_v62 = vadd.f32 %v1549_v13, %v1394_v47  ;;  %v1551_v63 = vpop.f32.mrb[31].mxu0  ;;  %v2786_v54 = vld [vmem:[#allocation7 + $0x140] ss:$8 sps:$4 sm:$0xff]   ;;  %v2791_v39 = vld [vmem:[#allocation7 + $0x154] ss:$8 sps:$4 sm:$0xff]  }
 0x4ae   : > { %v1552_v60 = vadd.f32 %v1551_v63, %v3544_v56  ;;  %v3624_v49 = vadd.f32 %v1548_v50, %v3508_v27  ;;  %v2779_v27 = vld [vmem:[#allocation7 + $0x114] ss:$8 sps:$4 sm:$0xff]   ;;  %v2794_v13 = vld [vmem:[#allocation7 + $0x164] ss:$8 sps:$4 sm:$0xff]   ;;  %v2795_v63 = vld [vmem:[#allocation7 + $0x170] ss:$8 sps:$4 sm:$0xff]  }
 0x4af   : > { %v3586_v1 = vadd.f32 %v1550_v62, %v973_v38  ;;  %2071 = vmatprep.subr.bf16.mxu1 %v2779_v27  ;;  %v2792_v38 = vld [vmem:[#allocation7 + $0x160] ss:$8 sps:$4 sm:$0xff]   ;;  %v2797_v62 = vld [vmem:[#allocation7 + $0x174] ss:$8 sps:$4 sm:$0xff]  }
 0x4b0   : > { %v3591_v43 = vadd.f32 %v1552_v60, %v3478_v3  ;;  %v1542_v3 = vadd.f32 %v1541_v36, %v3544_v56  ;;  %v1592_v30 = vrot.slane %v3624_v49, 4  ;;  %v2777_v36 = vld [vmem:[#allocation7 + $0x110] ss:$8 sps:$4 sm:$0xff]   ;;  %v1655_v60 = vrot.slane %v2450_v0, %v3423_v22 }
 0x4b1   : > { %2072 = vmatpush1.bf16.msra.mxu1 %v2777_v36 }
 0x4b2   : > { %v1571_v47 = vrot.slane %v3591_v43, 4  ;;  %v3610_v20 = vadd.f32 %v1542_v3, %v3495_v16  ;;  %v1611_v29 = vpack.c.bf16 %v3591_v43, %v3624_v49  ;;  %2073 = vmatprep.subr.bf16.mxu1 %v2782_v58 }
 0x4b4   : > { %v1603_v12 = vsel %vm1580_vm2, %v1571_v47, %v1581_v6  ;;  %v1590_v51 = vrot.slane %v3610_v20, 4  ;;  %v1610_v2 = vpack.c.bf16 %v3610_v20, %v3614_v21  ;;  %v1594_v24 = vsel %vm1580_vm2, %v1592_v30, %v1571_v47 }
 0x4b5   : > { %v1604_v40 = vpack.c.bf16 %v1583_v45, %v1603_v12  ;;  %2074 = vmatpush1.bf16.msra.mxu1 %v2780_v44 }
 0x4b6   : > { %v1591_v16 = vsel %vm1580_vm2, %v1588_v26, %v1590_v51  ;;  %v1593_v56 = vsel %vm1580_vm2, %v1590_v51, %v1592_v30  ;;  %2075 = vmatprep.subr.bf16.mxu1 %v2785_v46 }
 0x4b7   : > { %1851 = vmatmul.mubr.bf16.vlgmr.msra.gmra.mrb[32].mxu0 %v1604_v40  ;;  %v1606_v28 = vpack.c.bf16 %v1591_v16, %v1589_v17  ;;  %v1607_v31 = vpack.c.bf16 %v1594_v24, %v1593_v56 }
 0x4b8   : > { %1860 = vmatprep.mubr.bf16.mxu0 %v1609_v19 }
 0x4b9   : > { %2076 = vmatpush1.bf16.msra.mxu1 %v2783_v53 }
 0x4ba   : > { %2077 = vmatprep.subr.bf16.mxu1 %v2788_v59 }
 0x4bd   : > { %2078 = vmatpush1.bf16.msra.mxu1 %v2786_v54 }
 0x4be   : > { %2079 = vmatprep.subr.bf16.mxu1 %v2791_v39 }
 0x4bf   : > { %1861 = vmatmul.mubr.bf16.gmra.mrb[36].mxu0 %v1605_v25 }
 0x4c0   : > { %1870 = vmatprep.mubr.bf16.mxu0 %v1610_v2 }
 0x4c1   : > { %2080 = vmatpush1.bf16.msra.mxu1 %v2789_v37 }
 0x4c2   : > { %2081 = vmatprep.subr.bf16.mxu1 %v2794_v13 }
 0x4c5   : > { %2082 = vmatpush1.bf16.msra.mxu1 %v2792_v38 }
 0x4c6   : > { %2083 = vmatprep.subr.bf16.mxu1 %v2797_v62 }
 0x4c7   : > { %1871 = vmatmul.mubr.bf16.gmra.mrb[40].mxu0 %v1606_v28 }
 0x4c8   : > { %1880 = vmatprep.mubr.bf16.mxu0 %v1611_v29 }
 0x4c9   : > { %2084 = vmatpush1.bf16.msra.mxu1 %v2795_v63 }
 0x4cf   : > { %1881 = vmatmul.mubr.bf16.gmra.mrb[44].mxu0 %v1607_v31 }
 0x58a   : > { %v1852_v4 = vpop.f32.mrb[32].mxu0 }
 0x58b   : > { %v1854_v61 = vpop.f32.mrb[33].mxu0  ;;  %v1853_v2 = vadd.f32 %v1852_v4, %v3637_v5 }
 0x58c   : > { %v1855_v6 = vadd.f32 %v1854_v61, %v1655_v60  ;;  %v1856_v47 = vpop.f32.mrb[34].mxu0 }
 0x58d   : > { %v1858_v45 = vpop.f32.mrb[35].mxu0  ;;  %v1857_v16 = vadd.f32 %v1856_v47, %v3637_v5 }
 0x58e   : > { %v2483_v12 = vmul.f32 -1.442695, %v1855_v6  ;;  %v1859_v40 = vadd.f32 %v1858_v45, %v1655_v60 }
 0x590   : > { %2894 = vpow2.f32 %v2483_v12  ;;  %v2484_v15 = vmul.f32 -1.442695, %v1859_v40 }
 0x592   : > { %2896 = vpow2.f32 %v2484_v15  ;;  %v1862_v3 = vpop.f32.mrb[36].mxu0 }
 0x593   : > { %v1864_v19 = vpop.f32.mrb[37].mxu0  ;;  %v1863_v36 = vadd.f32 %v1862_v3, %v3637_v5 }
 0x594   : > { %v1865_v52 = vadd.f32 %v1864_v19, %v1655_v60  ;;  %v1866_v8 = vpop.f32.mrb[38].mxu0 }
 0x595   : > { %v1868_v23 = vpop.f32.mrb[39].mxu0  ;;  %v1867_v46 = vadd.f32 %v1866_v8, %v3637_v5 }
 0x596   : > { %v2485_v25 = vmul.f32 -1.442695, %v1865_v52  ;;  %v1869_v51 = vadd.f32 %v1868_v23, %v1655_v60 }
 0x598   : > { %2898 = vpow2.f32 %v2485_v25  ;;  %v2486_v26 = vmul.f32 -1.442695, %v1869_v51 }
 0x59a   : > { %v2895_v50 = vpop.eup %2894  ;;  %2900 = vpow2.f32 %v2486_v26  ;;  %v1872_v17 = vpop.f32.mrb[40].mxu0 }
 0x59b   : > { %v1923_v28 = vadd.f32 1.0, %v2895_v50  ;;  %v1874_v29 = vpop.f32.mrb[41].mxu0  ;;  %2902 = vtanh.f32 %v1853_v2  ;;  %v1873_v47 = vadd.f32 %v1872_v17, %v3637_v5 }
 0x59c   : > { %v2897_v30 = vpop.eup %2896  ;;  %v1875_v24 = vadd.f32 %v1874_v29, %v1655_v60  ;;  %v1876_v56 = vpop.f32.mrb[42].mxu0 }
 0x59d   : > { %2904 = vrcp.f32 %v1923_v28  ;;  %v1924_v31 = vadd.f32 1.0, %v2897_v30  ;;  %v1878_v34 = vpop.f32.mrb[43].mxu0  ;;  %v1877_v3 = vadd.f32 %v1876_v56, %v3637_v5 }
 0x59e   : > { %2906 = vtanh.f32 %v1857_v16  ;;  %v2487_v35 = vmul.f32 -1.442695, %v1875_v24  ;;  %v1879_v27 = vadd.f32 %v1878_v34, %v1655_v60 }
 0x59f   : > { %2908 = vrcp.f32 %v1924_v31 }
 0x5a0   : > { %2910 = vpow2.f32 %v2487_v35  ;;  %v2488_v58 = vmul.f32 -1.442695, %v1879_v27 }
 0x5a2   : > { %v2899_v44 = vpop.eup %2898  ;;  %2912 = vpow2.f32 %v2488_v58  ;;  %v1882_v53 = vpop.f32.mrb[44].mxu0 }
 0x5a3   : > { %v1925_v59 = vadd.f32 1.0, %v2899_v44  ;;  %v1884_v54 = vpop.f32.mrb[45].mxu0  ;;  %2914 = vtanh.f32 %v1863_v36  ;;  %v1883_v26 = vadd.f32 %v1882_v53, %v3637_v5 }
 0x5a4   : > { %v2901_v39 = vpop.eup %2900  ;;  %v1885_v37 = vadd.f32 %v1884_v54, %v1655_v60  ;;  %v1886_v13 = vpop.f32.mrb[46].mxu0 }
 0x5a5   : > { %2916 = vrcp.f32 %v1925_v59  ;;  %v1926_v38 = vadd.f32 1.0, %v2901_v39  ;;  %v1888_v62 = vpop.f32.mrb[47].mxu0  ;;  %v2903_v63 = vpop.eup %2902  ;;  %v1887_v28 = vadd.f32 %v1886_v13, %v3637_v5 }
 0x5a6   : > { %2918 = vtanh.f32 %v1867_v46  ;;  %v2489_v0 = vmul.f32 -1.442695, %v1885_v37  ;;  %v1889_v4 = vadd.f32 %v1888_v62, %v1655_v60 }
 0x5a7   : > { %v2905_v61 = vpop.eup %2904  ;;  %2920 = vrcp.f32 %v1926_v38  ;;  %v2491_v38 = vld [vmem:[%s3717_s5 + $0x4] sm:$0x3] }
 0x5a8   : > { %v2907_v6 = vpop.eup %2906  ;;  %2922 = vpow2.f32 %v2489_v0  ;;  %v2490_v45 = vmul.f32 -1.442695, %v1889_v4  ;;  %v1947_v12 = vmul.f32 %v2905_v61, %v2903_v63  ;;  %v1982_v62 = vrot.slane %v2491_v38, %v3429_v33 }
 0x5a9   : > { %v2909_v40 = vpop.eup %2908  ;;  %v1986_v63 = vrot.slane %v2491_v38, %v3423_v22 }
 0x5aa   : > { %v2911_v15 = vpop.eup %2910  ;;  %2924 = vpow2.f32 %v2490_v45  ;;  %v1948_v19 = vmul.f32 %v2909_v40, %v2907_v6 }
 0x5ab   : > { %v1927_v52 = vadd.f32 1.0, %v2911_v15  ;;  %2926 = vtanh.f32 %v1873_v47 }
 0x5ac   : > { %v2913_v8 = vpop.eup %2912  ;;  %v1955_v23 = vpack.c.bf16 %v1948_v19, %v1947_v12 }
 0x5ad   : > { %2928 = vrcp.f32 %v1927_v52  ;;  %v1928_v60 = vadd.f32 1.0, %v2913_v8  ;;  %v2915_v25 = vpop.eup %2914 }
 0x5ae   : > { %2930 = vtanh.f32 %v1877_v3  ;;  %2102 = vmatmul.mubr.bf16.vlgmr.msra.gmra.mrb[32].mxu1 %v1955_v23 }
 0x5af   : > { %v2917_v51 = vpop.eup %2916  ;;  %2932 = vrcp.f32 %v1928_v60  ;;  %2111 = vmatprep.mubr.bf16.mxu1 %v3112_v18 }
 0x5b0   : > { %v2919_v2 = vpop.eup %2918  ;;  %v1949_v50 = vmul.f32 %v2917_v51, %v2915_v25  ;;  %2934 = vtanh.f32 %v1883_v26 }
 0x5b1   : > { %v2921_v16 = vpop.eup %2920 }
 0x5b2   : > { %v2923_v17 = vpop.eup %2922  ;;  %v1950_v29 = vmul.f32 %v2921_v16, %v2919_v2 }
 0x5b3   : > { %v1929_v30 = vadd.f32 1.0, %v2923_v17 }
 0x5b4   : > { %v2925_v24 = vpop.eup %2924  ;;  %v1956_v56 = vpack.c.bf16 %v1950_v29, %v1949_v50 }
 0x5b5   : > { %2936 = vrcp.f32 %v1929_v30  ;;  %v1930_v31 = vadd.f32 1.0, %v2925_v24  ;;  %v2927_v34 = vpop.eup %2926 }
 0x5b6   : > { %2938 = vtanh.f32 %v1887_v28  ;;  %2112 = vmatmul.mubr.bf16.gmra.mrb[36].mxu1 %v1956_v56 }
 0x5b7   : > { %v2929_v35 = vpop.eup %2928  ;;  %2940 = vrcp.f32 %v1930_v31  ;;  %2121 = vmatprep.mubr.bf16.mxu1 %v3112_v18 }
 0x5b8   : > { %v2931_v27 = vpop.eup %2930  ;;  %v1951_v36 = vmul.f32 %v2929_v35, %v2927_v34 }
 0x5b9   : > { %v2933_v58 = vpop.eup %2932 }
 0x5ba   : > { %v1952_v5 = vmul.f32 %v2933_v58, %v2931_v27  ;;  %v2935_v46 = vpop.eup %2934 }
 0x5bc   : > { %v1957_v44 = vpack.c.bf16 %v1952_v5, %v1951_v36 }
 0x5be   : > { %2122 = vmatmul.mubr.bf16.gmra.mrb[40].mxu1 %v1957_v44 }
 0x5bf   : > { %v2937_v53 = vpop.eup %2936  ;;  %2131 = vmatprep.mubr.bf16.mxu1 %v3112_v18 }
 0x5c0   : > { %v2939_v59 = vpop.eup %2938  ;;  %v1953_v54 = vmul.f32 %v2937_v53, %v2935_v46 }
 0x5c1   : > { %v2941_v39 = vpop.eup %2940 }
 0x5c2   : > { %v1954_v37 = vmul.f32 %v2941_v39, %v2939_v59 }
 0x5c4   : > { %v1958_v13 = vpack.c.bf16 %v1954_v37, %v1953_v54 }
 0x5c6   : > { %2132 = vmatmul.mubr.bf16.gmra.mrb[44].mxu1 %v1958_v13 }
 0x681   : > { %v2103_v0 = vpop.f32.mrb[32].mxu1 }
 0x682   : > { %v2104_v4 = vadd.f32 %v2103_v0, %v1982_v62  ;;  %v2105_v18 = vpop.f32.mrb[33].mxu1 }
 0x683   : > { %v2106_v61 = vadd.f32 %v2105_v18, %v1986_v63  ;;  %v2107_v6 = vpop.f32.mrb[34].mxu1 }
 0x684   : > { %v2142_v47 = vadd.f32 %v2104_v4, %v3549_v42  ;;  %v2108_v22 = vadd.f32 %v2107_v6, %v1982_v62  ;;  %v2109_v33 = vpop.f32.mrb[35].mxu1 }
 0x685   : > { %v2150_v45 = vadd.f32 %v2106_v61, %v3557_v10  ;;  %v2110_v12 = vadd.f32 %v2109_v33, %v1986_v63 }
 0x686   : > { %2166 = vst [vmem:[%s3660_s17 - $0x7] sm:$0x80] %v2142_v47  ;;  %v2143_v40 = vadd.f32 %v2108_v22, %v3553_v9 }
 0x687   : > { %2158 = vst [vmem:[%s3666_s9 - $0x7] sm:$0x80] %v2150_v45  ;;  %v2151_v42 = vadd.f32 %v2110_v12, %v3560_v11 }
 0x688   : > { %2167 = vst [vmem:[%s3660_s17 + $0x1] sm:$0xff] %v2143_v40 }
 0x689   : > { %2159 = vst [vmem:[%s3666_s9 + $0x1] sm:$0xff] %v2151_v42  ;;  %v2113_v15 = vpop.f32.mrb[36].mxu1 }
 0x68a   : > { %v2114_v3 = vadd.f32 %v2113_v15, %v1982_v62  ;;  %v2115_v19 = vpop.f32.mrb[37].mxu1 }
 0x68b   : > { %v2116_v52 = vadd.f32 %v2115_v19, %v1986_v63  ;;  %v2117_v8 = vpop.f32.mrb[38].mxu1 }
 0x68c   : > { %v2144_v10 = vadd.f32 %v2114_v3, %v3566_v48  ;;  %v2118_v23 = vadd.f32 %v2117_v8, %v1982_v62  ;;  %v2119_v60 = vpop.f32.mrb[39].mxu1 }
 0x68d   : > { %v2152_v25 = vadd.f32 %v2116_v52, %v3600_v32  ;;  %v2120_v9 = vadd.f32 %v2119_v60, %v1986_v63 }
 0x68e   : > { %2168 = vst [vmem:[%s3660_s17 + $0x9] sm:$0xff] %v2144_v10  ;;  %v2145_v11 = vadd.f32 %v2118_v23, %v3569_v55 }
 0x68f   : > { %2160 = vst [vmem:[%s3666_s9 + $0x9] sm:$0xff] %v2152_v25  ;;  %v2153_v51 = vadd.f32 %v2120_v9, %v3595_v7 }
 0x690   : > { %2169 = vst [vmem:[%s3660_s17 + $0x11] sm:$0xff] %v2145_v11 }
 0x691   : > { %2161 = vst [vmem:[%s3666_s9 + $0x11] sm:$0xff] %v2153_v51  ;;  %v2123_v2 = vpop.f32.mrb[40].mxu1 }
 0x692   : > { %v2124_v26 = vadd.f32 %v2123_v2, %v1982_v62  ;;  %v2125_v48 = vpop.f32.mrb[41].mxu1 }
 0x693   : > { %v2126_v50 = vadd.f32 %v2125_v48, %v1986_v63  ;;  %v2127_v16 = vpop.f32.mrb[42].mxu1 }
 0x694   : > { %v2146_v32 = vadd.f32 %v2124_v26, %v3574_v57  ;;  %v2128_v17 = vadd.f32 %v2127_v16, %v1982_v62  ;;  %v2129_v28 = vpop.f32.mrb[43].mxu1 }
 0x695   : > { %v2154_v29 = vadd.f32 %v2126_v50, %v3614_v21  ;;  %v2130_v55 = vadd.f32 %v2129_v28, %v1986_v63 }
 0x696   : > { %2170 = vst [vmem:[%s3660_s17 + $0x19] sm:$0xff] %v2146_v32  ;;  %v2147_v7 = vadd.f32 %v2128_v17, %v3577_v41 }
 0x697   : > { %2162 = vst [vmem:[%s3666_s9 + $0x19] sm:$0xff] %v2154_v29  ;;  %v2155_v30 = vadd.f32 %v2130_v55, %v3610_v20 }
 0x698   : > { %2171 = vst [vmem:[%s3660_s17 + $0x21] sm:$0xff] %v2147_v7 }
 0x699   : > { %2163 = vst [vmem:[%s3666_s9 + $0x21] sm:$0xff] %v2155_v30  ;;  %v2133_v24 = vpop.f32.mrb[44].mxu1 }
 0x69a   : > { %v2134_v56 = vadd.f32 %v2133_v24, %v1982_v62  ;;  %v2135_v57 = vpop.f32.mrb[45].mxu1 }
 0x69b   : > { %v2136_v31 = vadd.f32 %v2135_v57, %v1986_v63  ;;  %v2137_v34 = vpop.f32.mrb[46].mxu1 }
 0x69c   : > { %v2148_v21 = vadd.f32 %v2134_v56, %v3582_v14  ;;  %v2138_v35 = vadd.f32 %v2137_v34, %v1982_v62  ;;  %v2139_v27 = vpop.f32.mrb[47].mxu1 }
 0x69d   : > { %v2156_v36 = vadd.f32 %v2136_v31, %v3624_v49  ;;  %v2140_v41 = vadd.f32 %v2139_v27, %v1986_v63 }
 0x69e   : > { %2172 = vst [vmem:[%s3660_s17 + $0x29] sm:$0xff] %v2148_v21  ;;  %v2149_v58 = vadd.f32 %v2138_v35, %v3586_v1 }
 0x69f   : > { %2164 = vst [vmem:[%s3666_s9 + $0x29] sm:$0xff] %v2156_v36  ;;  %v2157_v20 = vadd.f32 %v2140_v41, %v3591_v43 }
 0x6a0   : > { %2173 = vst [vmem:[%s3660_s17 + $0x31] sm:$0xff] %v2149_v58 }
 0x6a1   : > { %2165 = vst [vmem:[%s3666_s9 + $0x31] sm:$0xff] %v2157_v20 }
 0x6a2 PF: > { %p22_p12 = scmp.ge.s32.totalorder %s3252_s20, 4   ;;  %s3745_s24 = smov %s3096_s25 }
 0x6a3   : > { %s3746_s25 = smov %s3100_s26  ;;  %s3747_s26 = smov %s3263_s8 }
 0x6a4   : > { %s3748_s27 = smov %s3252_s20  ;;  %24 = sbr.rel (!%p22_p12) target bundleno = 10 (0xa), region = 125 }
 0x6ab   :  { %2211 = vsyncpa [#allocation3], 1 }
 0x6ac   :  { %2213 = vsyncpa [#allocation3 + $0x1], 1 }
 0x6ad   :  { %2214 = vsyncpa [#allocation5], 1 }
 0x6ae   :  { %2216 = vsyncpa [#allocation5 + $0x1], 1 }
 0x6af   :  { %2217 = vsyncpa [#allocation8], 1 }

</bundles_post_ra>
